<compile_context>
chip_gen: v7x
topology: tpu7x:2x2x1
jax: 0.10.0
libtpu: 0.0.40
codegen_flags: <defaults>
</compile_context>

<pallas_src>
import functools
import math

import jax
import jax.numpy as jnp
from jax import lax
from jax.experimental import pallas as pl
from jax.experimental.pallas import tpu as pltpu

_BN_EPS = 1e-5
# Flip to jnp.bfloat16 at production sizes (MXU operands only; accumulation
# stays f32 via preferred_element_type).  Kept f32 here for a tight check.
_MATMUL_DTYPE = jnp.float32


def _gelu_exact(x):
    # PyTorch nn.GELU() default (approximate='none'): 0.5*x*(1 + erf(x/sqrt(2)))
    return 0.5 * x * (1.0 + lax.erf(x * (1.0 / math.sqrt(2.0))))


def _fused_layer_kernel(x_ref, wq_ref, bq_ref, wk_ref, bk_ref, wv_ref, bv_ref,
                        wo_ref, bo_ref, gamma_ref, beta_ref, fc1_ref, fc2_ref,
                        o_ref, att_ref, sum_ref, ssq_ref, *, num_global_heads):
    n = pl.program_id(0)                    # batch element handled this step
    NB, L, C = x_ref.shape                  # static Python ints
    G = num_global_heads                    # 4 chunks * num_heads
    dh = C // G

    @pl.when(n == 0)
    def _init():
        sum_ref[...] = jnp.zeros_like(sum_ref)
        ssq_ref[...] = jnp.zeros_like(ssq_ref)

    xn = x_ref[n]                                            # (L, C) this batch
    xc = xn.astype(wq_ref.dtype)
    # Fused (Linear -> MHA in_proj) projections for all 4 chunks at once
    # (block-diagonal folded weights; softmax 1/sqrt(dh) folded into wq/bq).
    q = jnp.dot(xc, wq_ref[...], preferred_element_type=jnp.float32) + bq_ref[...]
    k = jnp.dot(xc, wk_ref[...], preferred_element_type=jnp.float32) + bk_ref[...]
    v = jnp.dot(xc, wv_ref[...], preferred_element_type=jnp.float32) + bv_ref[...]

    # True per-head attention: each (chunk, head) touches only its own dh
    # lanes -- no masks, no redundant FLOPs.  Static unroll; G is tiny here.
    head_outs = []
    for g in range(G):
        lo = g * dh
        qg = q[:, lo:lo + dh]
        kg = k[:, lo:lo + dh]
        vg = v[:, lo:lo + dh].astype(wq_ref.dtype)
        s = lax.dot_general(qg, kg, (((1,), (1,)), ((), ())),
                            preferred_element_type=jnp.float32)       # (L, L)
        s = s - jnp.max(s, axis=-1, keepdims=True)
        p = jnp.exp(s)
        p = p / jnp.sum(p, axis=-1, keepdims=True)       # exact reciprocal
        head_outs.append(jnp.dot(p.astype(vg.dtype), vg,
                                 preferred_element_type=jnp.float32))
    attn = jnp.concatenate(head_outs, axis=-1)                         # (L, C)

    # MHA out-projection (block-diagonal over the 4 chunks).
    ao = jnp.dot(attn.astype(wo_ref.dtype), wo_ref[...],
                 preferred_element_type=jnp.float32) + bo_ref[...]

    # Stage activations + accumulate BatchNorm sum / sum-of-squares.
    att_ref[n] = ao
    sum_ref[...] += jnp.sum(ao, axis=0, keepdims=True)
    ssq_ref[...] += jnp.sum(ao * ao, axis=0, keepdims=True)

    @pl.when(n == NB - 1)
    def _finalize():
        R = NB * L
        inv_r = 1.0 / float(R)
        mean = sum_ref[...] * inv_r
        var = ssq_ref[...] * inv_r - mean * mean
        att = att_ref[...].reshape(R, C)
        bn = (att - mean) * lax.rsqrt(var + _BN_EPS) * gamma_ref[...] + beta_ref[...]
        y = _gelu_exact(bn) + x_ref[...].reshape(R, C)         # split residual
        # FFN: fc2(fc1(y)) + y   (both Linear(C, C, bias=False))
        h1 = jnp.dot(y.astype(fc1_ref.dtype), fc1_ref[...],
                     preferred_element_type=jnp.float32)
        o_ref[...] = jnp.dot(h1.astype(fc2_ref.dtype), fc2_ref[...],
                             preferred_element_type=jnp.float32) + y


def split_transformer_forward(x, kparams, num_heads):
    """x: (L, N, C) float32; kparams: dict produced by fold_params."""
    L, N, C = x.shape
    G = 4 * num_heads
    # Batch-major layout (row = n*L + l): per-batch attention needs no mask.
    xb = jnp.transpose(x, (1, 0, 2))                           # (N, L, C)

    def full_spec(shape):
        nd = len(shape)
        return pl.BlockSpec(shape, lambda n: (0,) * nd)

    kernel = functools.partial(_fused_layer_kernel, num_global_heads=G)

    out2d = pl.pallas_call(
        kernel,
        out_shape=jax.ShapeDtypeStruct((N * L, C), jnp.float32),
        grid=(N,),
        in_specs=[
            full_spec((N, L, C)),                   # x (resident; sliced per step)
            full_spec((C, C)), full_spec((1, C)),   # fused q proj (scale folded)
            full_spec((C, C)), full_spec((1, C)),   # fused k proj
            full_spec((C, C)), full_spec((1, C)),   # fused v proj
            full_spec((C, C)), full_spec((1, C)),   # out_proj (block-diag) w / b
            full_spec((1, C)), full_spec((1, C)),   # bn gamma / beta (tiled x4)
            full_spec((C, C)), full_spec((C, C)),   # fc1.T, fc2.T
        ],
        out_specs=pl.BlockSpec((N * L, C), lambda n: (0, 0)),
        scratch_shapes=[
            pltpu.VMEM((N, L, C), jnp.float32),     # staged attention output
            pltpu.VMEM((1, C), jnp.float32),        # BN running sum
            pltpu.VMEM((1, C), jnp.float32),        # BN running sum of squares
        ],
        compiler_params=pltpu.CompilerParams(
            dimension_semantics=("arbitrary",),     # BN reduces across batch
            vmem_limit_bytes=32 * 1024 * 1024),
    )(xb, kparams["wq"], kparams["bq"], kparams["wk"], kparams["bk"],
      kparams["wv"], kparams["bv"], kparams["wo"], kparams["bo"],
      kparams["gamma"], kparams["beta"], kparams["fc1"], kparams["fc2"])
    return jnp.transpose(out2d.reshape(N, L, C), (1, 0, 2))


def init_params(key, C):
    """Raw PyTorch-style parameters (used by the pure-JAX reference)."""
    E = C // 4
    ks = jax.random.split(key, 11)

    def nrm(k, shape, s):
        return s * jax.random.normal(k, shape, jnp.float32)

    return dict(
        wq=nrm(ks[0], (E, E), 1.0 / math.sqrt(E)),        # Linear weights (out,in)
        wk=nrm(ks[1], (E, E), 1.0 / math.sqrt(E)),
        wv=nrm(ks[2], (E, E), 1.0 / math.sqrt(E)),
        win=nrm(ks[3], (3 * E, E), 1.0 / math.sqrt(E)),   # MHA in_proj_weight
        binb=nrm(ks[4], (3 * E,), 0.1),                   # MHA in_proj_bias
        wo=nrm(ks[5], (E, E), 1.0 / math.sqrt(E)),        # MHA out_proj.weight
        bo=nrm(ks[6], (E,), 0.1),                         # MHA out_proj.bias
        gamma=1.0 + nrm(ks[7], (E,), 0.1),                # bnSplit.weight
        beta=nrm(ks[8], (E,), 0.1),                       # bnSplit.bias
        fc1=nrm(ks[9], (C, C), 1.0 / math.sqrt(C)),
        fc2=nrm(ks[10], (C, C), 1.0 / math.sqrt(C)),
    )


def fold_params(p, C, num_heads):
    """Host-side algebraic folding -> kernel weights (exact numerics).

    * Wq_eff = wq.T @ in_proj_q.T (chained Linear -> MHA in-projection), with
      the softmax 1/sqrt(head_dim) scale folded into Wq_eff / bq.
    * Per-chunk (E, E) weights are block-diagonalized over the 4 chunks so a
      single (rows, C) @ (C, C) matmul handles all chunks at once.  (Only
      worthwhile while E = C/4 is below the MXU tile; at scale make chunks a
      parallel grid axis instead.)
    """
    E = C // 4
    dh = E // num_heads
    scale = 1.0 / math.sqrt(dh)
    eye4 = jnp.eye(4, dtype=jnp.float32)

    def bd(m):                                  # block-diag repeat over 4 chunks
        return jnp.kron(eye4, m).astype(_MATMUL_DTYPE)

    def tile(v):
        return jnp.tile(v, 4).reshape(1, C).astype(jnp.float32)

    wq_eff = (p["wq"].T @ p["win"][:E].T) * scale
    wk_eff = p["wk"].T @ p["win"][E:2 * E].T
    wv_eff = p["wv"].T @ p["win"][2 * E:].T

    return dict(
        wq=bd(wq_eff), bq=tile(p["binb"][:E] * scale),
        wk=bd(wk_eff), bk=tile(p["binb"][E:2 * E]),
        wv=bd(wv_eff), bv=tile(p["binb"][2 * E:]),
        wo=bd(p["wo"].T), bo=tile(p["bo"]),
        gamma=tile(p["gamma"]), beta=tile(p["beta"]),
        fc1=p["fc1"].T.astype(_MATMUL_DTYPE),
        fc2=p["fc2"].T.astype(_MATMUL_DTYPE))


def ref_forward(x, p, num_heads):
    # Pure-JAX reference mirroring the PyTorch forward (no Pallas).
    L, N, C = x.shape
    E = C // 4
    H = num_heads
    dh = E // H
    chunks = []
    for i in range(4):
        xs = x[:, :, i * E:(i + 1) * E]
        qe, ke, ve = xs @ p["wq"].T, xs @ p["wk"].T, xs @ p["wv"].T
        q = qe @ p["win"][:E].T + p["binb"][:E]
        k = ke @ p["win"][E:2 * E].T + p["binb"][E:2 * E]
        v = ve @ p["win"][2 * E:].T + p["binb"][2 * E:]
        q = q.reshape(L, N, H, dh)
        k = k.reshape(L, N, H, dh)
        v = v.reshape(L, N, H, dh)
        s = jnp.einsum("lnhd,mnhd->nhlm", q, k) / math.sqrt(dh)
        a = jax.nn.softmax(s, axis=-1)
        o = jnp.einsum("nhlm,mnhd->lnhd", a, v).reshape(L, N, E)
        ao = o @ p["wo"].T + p["bo"]
        mean = ao.mean(axis=(0, 1))
        var = ((ao - mean) ** 2).mean(axis=(0, 1))
        bn = (ao - mean) / jnp.sqrt(var + _BN_EPS) * p["gamma"] + p["beta"]
        g = 0.5 * bn * (1.0 + jax.scipy.special.erf(bn / math.sqrt(2.0)))
        chunks.append(g + xs)
    y = jnp.concatenate(chunks, axis=-1)
    return (y @ p["fc1"].T) @ p["fc2"].T + y


if __name__ == "__main__":
    L, N, C, H = 8, 2, 32, 2            # seq=8, batch=2, channels=32, heads=2
    key = jax.random.PRNGKey(0)
    kx, kp = jax.random.split(key)
    x = jax.random.normal(kx, (L, N, C), jnp.float32)
    params = init_params(kp, C)
    kparams = fold_params(params, C, H)

    out = split_transformer_forward(x, kparams, H)
    out = jax.block_until_ready(out)
    assert out.shape == (L, N, C)

    with jax.default_matmul_precision("highest"):
        ref = ref_forward(x, params, H)
    ref = jax.block_until_ready(ref)

    err = float(jnp.max(jnp.abs(out - ref)))
    # Exact-reciprocal softmax + all-f32 matmuls: typically agrees to ~1e-5;
    # tolerance leaves headroom for MXU multi-pass vs. XLA rounding details.
    assert bool(jnp.allclose(out, ref, atol=1e-2, rtol=1e-2)), (
        "max abs diff %.3e" % err)
    print("KERNEL_OK")
</pallas_src>

<mosaic_0001>
module attributes {stable_mosaic.version = 11 : i64} {
  func.func @_fused_layer_kernel(%arg0: i32, %arg1: memref<2x8x32xf32, #tpu.memory_space<vmem>>, %arg2: memref<32x32xf32, #tpu.memory_space<vmem>>, %arg3: memref<1x32xf32, #tpu.memory_space<vmem>>, %arg4: memref<32x32xf32, #tpu.memory_space<vmem>>, %arg5: memref<1x32xf32, #tpu.memory_space<vmem>>, %arg6: memref<32x32xf32, #tpu.memory_space<vmem>>, %arg7: memref<1x32xf32, #tpu.memory_space<vmem>>, %arg8: memref<32x32xf32, #tpu.memory_space<vmem>>, %arg9: memref<1x32xf32, #tpu.memory_space<vmem>>, %arg10: memref<1x32xf32, #tpu.memory_space<vmem>>, %arg11: memref<1x32xf32, #tpu.memory_space<vmem>>, %arg12: memref<32x32xf32, #tpu.memory_space<vmem>>, %arg13: memref<32x32xf32, #tpu.memory_space<vmem>>, %arg14: memref<16x32xf32, #tpu.memory_space<vmem>>, %arg15: memref<2x8x32xf32, #tpu.memory_space<vmem>>, %arg16: memref<1x32xf32, #tpu.memory_space<vmem>>, %arg17: memref<1x32xf32, #tpu.memory_space<vmem>>) attributes {dimension_semantics = [#tpu.dimension_semantics<arbitrary>], iteration_bounds = array<i64: 2>, scalar_prefetch = 0 : i64, scratch_operands = 3 : i64, tpu.core_type = #tpu.core_type<tc>, window_params = [{pipeline_mode = #tpu.pipeline_mode<synchronous>, transform_indices = @transform_0, window_bounds = array<i64: 2, 8, 32>}, {pipeline_mode = #tpu.pipeline_mode<synchronous>, transform_indices = @transform_1, window_bounds = array<i64: 32, 32>}, {pipeline_mode = #tpu.pipeline_mode<synchronous>, transform_indices = @transform_2, window_bounds = array<i64: 1, 32>}, {pipeline_mode = #tpu.pipeline_mode<synchronous>, transform_indices = @transform_3, window_bounds = array<i64: 32, 32>}, {pipeline_mode = #tpu.pipeline_mode<synchronous>, transform_indices = @transform_4, window_bounds = array<i64: 1, 32>}, {pipeline_mode = #tpu.pipeline_mode<synchronous>, transform_indices = @transform_5, window_bounds = array<i64: 32, 32>}, {pipeline_mode = #tpu.pipeline_mode<synchronous>, transform_indices = @transform_6, window_bounds = array<i64: 1, 32>}, {pipeline_mode = #tpu.pipeline_mode<synchronous>, transform_indices = @transform_7, window_bounds = array<i64: 32, 32>}, {pipeline_mode = #tpu.pipeline_mode<synchronous>, transform_indices = @transform_8, window_bounds = array<i64: 1, 32>}, {pipeline_mode = #tpu.pipeline_mode<synchronous>, transform_indices = @transform_9, window_bounds = array<i64: 1, 32>}, {pipeline_mode = #tpu.pipeline_mode<synchronous>, transform_indices = @transform_10, window_bounds = array<i64: 1, 32>}, {pipeline_mode = #tpu.pipeline_mode<synchronous>, transform_indices = @transform_11, window_bounds = array<i64: 32, 32>}, {pipeline_mode = #tpu.pipeline_mode<synchronous>, transform_indices = @transform_12, window_bounds = array<i64: 32, 32>}, {pipeline_mode = #tpu.pipeline_mode<synchronous>, transform_indices = @transform_13, window_bounds = array<i64: 16, 32>}]} {
    %c0_i32 = arith.constant 0 : i32
    %0 = arith.cmpi eq, %arg0, %c0_i32 : i32
    %1 = arith.extui %0 : i1 to i32
    %c0_i32_0 = arith.constant 0 : i32
    %2 = arith.cmpi ne, %1, %c0_i32_0 : i32
    scf.if %2 {
      %cst_66 = arith.constant 0.000000e+00 : f32
      %157 = vector.broadcast %cst_66 : f32 to vector<1x32xf32>
      %c0_67 = arith.constant 0 : index
      %c0_68 = arith.constant 0 : index
      %158 = vector.load %arg16[%c0_67, %c0_68] : memref<1x32xf32, #tpu.memory_space<vmem>>, vector<1x32xf32>
      tpu.vector_store %arg16[%c0_67, %c0_68], %157 {strides = array<i32>} : memref<1x32xf32, #tpu.memory_space<vmem>>, vector<1x32xf32>,
      %cst_69 = arith.constant 0.000000e+00 : f32
      %159 = vector.broadcast %cst_69 : f32 to vector<1x32xf32>
      %c0_70 = arith.constant 0 : index
      %c0_71 = arith.constant 0 : index
      %160 = vector.load %arg17[%c0_70, %c0_71] : memref<1x32xf32, #tpu.memory_space<vmem>>, vector<1x32xf32>
      tpu.vector_store %arg17[%c0_70, %c0_71], %159 {strides = array<i32>} : memref<1x32xf32, #tpu.memory_space<vmem>>, vector<1x32xf32>,
    } else {
    }
    %3 = arith.index_cast %arg0 : i32 to index
    %c0 = arith.constant 0 : index
    %c0_1 = arith.constant 0 : index
    %4 = vector.load %arg1[%3, %c0, %c0_1] : memref<2x8x32xf32, #tpu.memory_space<vmem>>, vector<1x8x32xf32>
    %5 = vector.shape_cast %4 : vector<1x8x32xf32> to vector<8x32xf32>
    %c0_2 = arith.constant 0 : index
    %c0_3 = arith.constant 0 : index
    %6 = vector.load %arg2[%c0_2, %c0_3] : memref<32x32xf32, #tpu.memory_space<vmem>>, vector<32x32xf32>
    %cst = arith.constant dense<0.000000e+00> : vector<8x32xf32>
    %7 = tpu.matmul %5, %6, %cst {dimension_numbers = #tpu.dot_dimension_numbers<[1], [0], [0], [1], [0, 0, 1, 1], [], []>} : vector<8x32xf32>, vector<32x32xf32>, vector<8x32xf32> -> vector<8x32xf32>
    %c0_4 = arith.constant 0 : index
    %c0_5 = arith.constant 0 : index
    %8 = vector.load %arg3[%c0_4, %c0_5] : memref<1x32xf32, #tpu.memory_space<vmem>>, vector<1x32xf32>
    %9 = vector.broadcast %8 : vector<1x32xf32> to vector<8x32xf32>
    %10 = arith.addf %7, %9 : vector<8x32xf32>
    %c0_6 = arith.constant 0 : index
    %c0_7 = arith.constant 0 : index
    %11 = vector.load %arg4[%c0_6, %c0_7] : memref<32x32xf32, #tpu.memory_space<vmem>>, vector<32x32xf32>
    %cst_8 = arith.constant dense<0.000000e+00> : vector<8x32xf32>
    %12 = tpu.matmul %5, %11, %cst_8 {dimension_numbers = #tpu.dot_dimension_numbers<[1], [0], [0], [1], [0, 0, 1, 1], [], []>} : vector<8x32xf32>, vector<32x32xf32>, vector<8x32xf32> -> vector<8x32xf32>
    %c0_9 = arith.constant 0 : index
    %c0_10 = arith.constant 0 : index
    %13 = vector.load %arg5[%c0_9, %c0_10] : memref<1x32xf32, #tpu.memory_space<vmem>>, vector<1x32xf32>
    %14 = vector.broadcast %13 : vector<1x32xf32> to vector<8x32xf32>
    %15 = arith.addf %12, %14 : vector<8x32xf32>
    %c0_11 = arith.constant 0 : index
    %c0_12 = arith.constant 0 : index
    %16 = vector.load %arg6[%c0_11, %c0_12] : memref<32x32xf32, #tpu.memory_space<vmem>>, vector<32x32xf32>
    %cst_13 = arith.constant dense<0.000000e+00> : vector<8x32xf32>
    %17 = tpu.matmul %5, %16, %cst_13 {dimension_numbers = #tpu.dot_dimension_numbers<[1], [0], [0], [1], [0, 0, 1, 1], [], []>} : vector<8x32xf32>, vector<32x32xf32>, vector<8x32xf32> -> vector<8x32xf32>
    %c0_14 = arith.constant 0 : index
    %c0_15 = arith.constant 0 : index
    %18 = vector.load %arg7[%c0_14, %c0_15] : memref<1x32xf32, #tpu.memory_space<vmem>>, vector<1x32xf32>
    %19 = vector.broadcast %18 : vector<1x32xf32> to vector<8x32xf32>
    %20 = arith.addf %17, %19 : vector<8x32xf32>
    %21 = vector.extract_strided_slice %10 {offsets = [0, 0], sizes = [8, 4], strides = [1, 1]} : vector<8x32xf32> to vector<8x4xf32>
    %22 = vector.extract_strided_slice %15 {offsets = [0, 0], sizes = [8, 4], strides = [1, 1]} : vector<8x32xf32> to vector<8x4xf32>
    %23 = vector.extract_strided_slice %20 {offsets = [0, 0], sizes = [8, 4], strides = [1, 1]} : vector<8x32xf32> to vector<8x4xf32>
    %cst_16 = arith.constant dense<0.000000e+00> : vector<8x8xf32>
    %24 = tpu.matmul %21, %22, %cst_16 {dimension_numbers = #tpu.dot_dimension_numbers<[1], [1], [0], [0], [0, 0, 1, 0], [], []>} : vector<8x4xf32>, vector<8x4xf32>, vector<8x8xf32> -> vector<8x8xf32>
    %cst_17 = arith.constant dense<0xFF800000> : vector<8xf32>
    %25 = vector.multi_reduction <maximumf>, %24, %cst_17 [1] : vector<8x8xf32> to vector<8xf32>
    %26 = vector.shape_cast %25 : vector<8xf32> to vector<8x1xf32>
    %27 = vector.broadcast %26 : vector<8x1xf32> to vector<8x8xf32>
    %28 = arith.subf %24, %27 : vector<8x8xf32>
    %29 = math.exp %28 : vector<8x8xf32>
    %cst_18 = arith.constant dense<0.000000e+00> : vector<8xf32>
    %30 = vector.multi_reduction <add>, %29, %cst_18 [1] : vector<8x8xf32> to vector<8xf32>
    %31 = vector.shape_cast %30 : vector<8xf32> to vector<8x1xf32>
    %32 = vector.broadcast %31 : vector<8x1xf32> to vector<8x8xf32>
    %33 = arith.divf %29, %32 : vector<8x8xf32>
    %cst_19 = arith.constant dense<0.000000e+00> : vector<8x4xf32>
    %34 = tpu.matmul %33, %23, %cst_19 {dimension_numbers = #tpu.dot_dimension_numbers<[1], [0], [0], [1], [0, 0, 1, 1], [], []>} : vector<8x8xf32>, vector<8x4xf32>, vector<8x4xf32> -> vector<8x4xf32>
    %35 = vector.extract_strided_slice %10 {offsets = [0, 4], sizes = [8, 4], strides = [1, 1]} : vector<8x32xf32> to vector<8x4xf32>
    %36 = vector.extract_strided_slice %15 {offsets = [0, 4], sizes = [8, 4], strides = [1, 1]} : vector<8x32xf32> to vector<8x4xf32>
    %37 = vector.extract_strided_slice %20 {offsets = [0, 4], sizes = [8, 4], strides = [1, 1]} : vector<8x32xf32> to vector<8x4xf32>
    %cst_20 = arith.constant dense<0.000000e+00> : vector<8x8xf32>
    %38 = tpu.matmul %35, %36, %cst_20 {dimension_numbers = #tpu.dot_dimension_numbers<[1], [1], [0], [0], [0, 0, 1, 0], [], []>} : vector<8x4xf32>, vector<8x4xf32>, vector<8x8xf32> -> vector<8x8xf32>
    %cst_21 = arith.constant dense<0xFF800000> : vector<8xf32>
    %39 = vector.multi_reduction <maximumf>, %38, %cst_21 [1] : vector<8x8xf32> to vector<8xf32>
    %40 = vector.shape_cast %39 : vector<8xf32> to vector<8x1xf32>
    %41 = vector.broadcast %40 : vector<8x1xf32> to vector<8x8xf32>
    %42 = arith.subf %38, %41 : vector<8x8xf32>
    %43 = math.exp %42 : vector<8x8xf32>
    %cst_22 = arith.constant dense<0.000000e+00> : vector<8xf32>
    %44 = vector.multi_reduction <add>, %43, %cst_22 [1] : vector<8x8xf32> to vector<8xf32>
    %45 = vector.shape_cast %44 : vector<8xf32> to vector<8x1xf32>
    %46 = vector.broadcast %45 : vector<8x1xf32> to vector<8x8xf32>
    %47 = arith.divf %43, %46 : vector<8x8xf32>
    %cst_23 = arith.constant dense<0.000000e+00> : vector<8x4xf32>
    %48 = tpu.matmul %47, %37, %cst_23 {dimension_numbers = #tpu.dot_dimension_numbers<[1], [0], [0], [1], [0, 0, 1, 1], [], []>} : vector<8x8xf32>, vector<8x4xf32>, vector<8x4xf32> -> vector<8x4xf32>
    %49 = vector.extract_strided_slice %10 {offsets = [0, 8], sizes = [8, 4], strides = [1, 1]} : vector<8x32xf32> to vector<8x4xf32>
    %50 = vector.extract_strided_slice %15 {offsets = [0, 8], sizes = [8, 4], strides = [1, 1]} : vector<8x32xf32> to vector<8x4xf32>
    %51 = vector.extract_strided_slice %20 {offsets = [0, 8], sizes = [8, 4], strides = [1, 1]} : vector<8x32xf32> to vector<8x4xf32>
    %cst_24 = arith.constant dense<0.000000e+00> : vector<8x8xf32>
    %52 = tpu.matmul %49, %50, %cst_24 {dimension_numbers = #tpu.dot_dimension_numbers<[1], [1], [0], [0], [0, 0, 1, 0], [], []>} : vector<8x4xf32>, vector<8x4xf32>, vector<8x8xf32> -> vector<8x8xf32>
    %cst_25 = arith.constant dense<0xFF800000> : vector<8xf32>
    %53 = vector.multi_reduction <maximumf>, %52, %cst_25 [1] : vector<8x8xf32> to vector<8xf32>
    %54 = vector.shape_cast %53 : vector<8xf32> to vector<8x1xf32>
    %55 = vector.broadcast %54 : vector<8x1xf32> to vector<8x8xf32>
    %56 = arith.subf %52, %55 : vector<8x8xf32>
    %57 = math.exp %56 : vector<8x8xf32>
    %cst_26 = arith.constant dense<0.000000e+00> : vector<8xf32>
    %58 = vector.multi_reduction <add>, %57, %cst_26 [1] : vector<8x8xf32> to vector<8xf32>
    %59 = vector.shape_cast %58 : vector<8xf32> to vector<8x1xf32>
    %60 = vector.broadcast %59 : vector<8x1xf32> to vector<8x8xf32>
    %61 = arith.divf %57, %60 : vector<8x8xf32>
    %cst_27 = arith.constant dense<0.000000e+00> : vector<8x4xf32>
    %62 = tpu.matmul %61, %51, %cst_27 {dimension_numbers = #tpu.dot_dimension_numbers<[1], [0], [0], [1], [0, 0, 1, 1], [], []>} : vector<8x8xf32>, vector<8x4xf32>, vector<8x4xf32> -> vector<8x4xf32>
    %63 = vector.extract_strided_slice %10 {offsets = [0, 12], sizes = [8, 4], strides = [1, 1]} : vector<8x32xf32> to vector<8x4xf32>
    %64 = vector.extract_strided_slice %15 {offsets = [0, 12], sizes = [8, 4], strides = [1, 1]} : vector<8x32xf32> to vector<8x4xf32>
    %65 = vector.extract_strided_slice %20 {offsets = [0, 12], sizes = [8, 4], strides = [1, 1]} : vector<8x32xf32> to vector<8x4xf32>
    %cst_28 = arith.constant dense<0.000000e+00> : vector<8x8xf32>
    %66 = tpu.matmul %63, %64, %cst_28 {dimension_numbers = #tpu.dot_dimension_numbers<[1], [1], [0], [0], [0, 0, 1, 0], [], []>} : vector<8x4xf32>, vector<8x4xf32>, vector<8x8xf32> -> vector<8x8xf32>
    %cst_29 = arith.constant dense<0xFF800000> : vector<8xf32>
    %67 = vector.multi_reduction <maximumf>, %66, %cst_29 [1] : vector<8x8xf32> to vector<8xf32>
    %68 = vector.shape_cast %67 : vector<8xf32> to vector<8x1xf32>
    %69 = vector.broadcast %68 : vector<8x1xf32> to vector<8x8xf32>
    %70 = arith.subf %66, %69 : vector<8x8xf32>
    %71 = math.exp %70 : vector<8x8xf32>
    %cst_30 = arith.constant dense<0.000000e+00> : vector<8xf32>
    %72 = vector.multi_reduction <add>, %71, %cst_30 [1] : vector<8x8xf32> to vector<8xf32>
    %73 = vector.shape_cast %72 : vector<8xf32> to vector<8x1xf32>
    %74 = vector.broadcast %73 : vector<8x1xf32> to vector<8x8xf32>
    %75 = arith.divf %71, %74 : vector<8x8xf32>
    %cst_31 = arith.constant dense<0.000000e+00> : vector<8x4xf32>
    %76 = tpu.matmul %75, %65, %cst_31 {dimension_numbers = #tpu.dot_dimension_numbers<[1], [0], [0], [1], [0, 0, 1, 1], [], []>} : vector<8x8xf32>, vector<8x4xf32>, vector<8x4xf32> -> vector<8x4xf32>
    %77 = vector.extract_strided_slice %10 {offsets = [0, 16], sizes = [8, 4], strides = [1, 1]} : vector<8x32xf32> to vector<8x4xf32>
    %78 = vector.extract_strided_slice %15 {offsets = [0, 16], sizes = [8, 4], strides = [1, 1]} : vector<8x32xf32> to vector<8x4xf32>
    %79 = vector.extract_strided_slice %20 {offsets = [0, 16], sizes = [8, 4], strides = [1, 1]} : vector<8x32xf32> to vector<8x4xf32>
    %cst_32 = arith.constant dense<0.000000e+00> : vector<8x8xf32>
    %80 = tpu.matmul %77, %78, %cst_32 {dimension_numbers = #tpu.dot_dimension_numbers<[1], [1], [0], [0], [0, 0, 1, 0], [], []>} : vector<8x4xf32>, vector<8x4xf32>, vector<8x8xf32> -> vector<8x8xf32>
    %cst_33 = arith.constant dense<0xFF800000> : vector<8xf32>
    %81 = vector.multi_reduction <maximumf>, %80, %cst_33 [1] : vector<8x8xf32> to vector<8xf32>
    %82 = vector.shape_cast %81 : vector<8xf32> to vector<8x1xf32>
    %83 = vector.broadcast %82 : vector<8x1xf32> to vector<8x8xf32>
    %84 = arith.subf %80, %83 : vector<8x8xf32>
    %85 = math.exp %84 : vector<8x8xf32>
    %cst_34 = arith.constant dense<0.000000e+00> : vector<8xf32>
    %86 = vector.multi_reduction <add>, %85, %cst_34 [1] : vector<8x8xf32> to vector<8xf32>
    %87 = vector.shape_cast %86 : vector<8xf32> to vector<8x1xf32>
    %88 = vector.broadcast %87 : vector<8x1xf32> to vector<8x8xf32>
    %89 = arith.divf %85, %88 : vector<8x8xf32>
    %cst_35 = arith.constant dense<0.000000e+00> : vector<8x4xf32>
    %90 = tpu.matmul %89, %79, %cst_35 {dimension_numbers = #tpu.dot_dimension_numbers<[1], [0], [0], [1], [0, 0, 1, 1], [], []>} : vector<8x8xf32>, vector<8x4xf32>, vector<8x4xf32> -> vector<8x4xf32>
    %91 = vector.extract_strided_slice %10 {offsets = [0, 20], sizes = [8, 4], strides = [1, 1]} : vector<8x32xf32> to vector<8x4xf32>
    %92 = vector.extract_strided_slice %15 {offsets = [0, 20], sizes = [8, 4], strides = [1, 1]} : vector<8x32xf32> to vector<8x4xf32>
    %93 = vector.extract_strided_slice %20 {offsets = [0, 20], sizes = [8, 4], strides = [1, 1]} : vector<8x32xf32> to vector<8x4xf32>
    %cst_36 = arith.constant dense<0.000000e+00> : vector<8x8xf32>
    %94 = tpu.matmul %91, %92, %cst_36 {dimension_numbers = #tpu.dot_dimension_numbers<[1], [1], [0], [0], [0, 0, 1, 0], [], []>} : vector<8x4xf32>, vector<8x4xf32>, vector<8x8xf32> -> vector<8x8xf32>
    %cst_37 = arith.constant dense<0xFF800000> : vector<8xf32>
    %95 = vector.multi_reduction <maximumf>, %94, %cst_37 [1] : vector<8x8xf32> to vector<8xf32>
    %96 = vector.shape_cast %95 : vector<8xf32> to vector<8x1xf32>
    %97 = vector.broadcast %96 : vector<8x1xf32> to vector<8x8xf32>
    %98 = arith.subf %94, %97 : vector<8x8xf32>
    %99 = math.exp %98 : vector<8x8xf32>
    %cst_38 = arith.constant dense<0.000000e+00> : vector<8xf32>
    %100 = vector.multi_reduction <add>, %99, %cst_38 [1] : vector<8x8xf32> to vector<8xf32>
    %101 = vector.shape_cast %100 : vector<8xf32> to vector<8x1xf32>
    %102 = vector.broadcast %101 : vector<8x1xf32> to vector<8x8xf32>
    %103 = arith.divf %99, %102 : vector<8x8xf32>
    %cst_39 = arith.constant dense<0.000000e+00> : vector<8x4xf32>
    %104 = tpu.matmul %103, %93, %cst_39 {dimension_numbers = #tpu.dot_dimension_numbers<[1], [0], [0], [1], [0, 0, 1, 1], [], []>} : vector<8x8xf32>, vector<8x4xf32>, vector<8x4xf32> -> vector<8x4xf32>
    %105 = vector.extract_strided_slice %10 {offsets = [0, 24], sizes = [8, 4], strides = [1, 1]} : vector<8x32xf32> to vector<8x4xf32>
    %106 = vector.extract_strided_slice %15 {offsets = [0, 24], sizes = [8, 4], strides = [1, 1]} : vector<8x32xf32> to vector<8x4xf32>
    %107 = vector.extract_strided_slice %20 {offsets = [0, 24], sizes = [8, 4], strides = [1, 1]} : vector<8x32xf32> to vector<8x4xf32>
    %cst_40 = arith.constant dense<0.000000e+00> : vector<8x8xf32>
    %108 = tpu.matmul %105, %106, %cst_40 {dimension_numbers = #tpu.dot_dimension_numbers<[1], [1], [0], [0], [0, 0, 1, 0], [], []>} : vector<8x4xf32>, vector<8x4xf32>, vector<8x8xf32> -> vector<8x8xf32>
    %cst_41 = arith.constant dense<0xFF800000> : vector<8xf32>
    %109 = vector.multi_reduction <maximumf>, %108, %cst_41 [1] : vector<8x8xf32> to vector<8xf32>
    %110 = vector.shape_cast %109 : vector<8xf32> to vector<8x1xf32>
    %111 = vector.broadcast %110 : vector<8x1xf32> to vector<8x8xf32>
    %112 = arith.subf %108, %111 : vector<8x8xf32>
    %113 = math.exp %112 : vector<8x8xf32>
    %cst_42 = arith.constant dense<0.000000e+00> : vector<8xf32>
    %114 = vector.multi_reduction <add>, %113, %cst_42 [1] : vector<8x8xf32> to vector<8xf32>
    %115 = vector.shape_cast %114 : vector<8xf32> to vector<8x1xf32>
    %116 = vector.broadcast %115 : vector<8x1xf32> to vector<8x8xf32>
    %117 = arith.divf %113, %116 : vector<8x8xf32>
    %cst_43 = arith.constant dense<0.000000e+00> : vector<8x4xf32>
    %118 = tpu.matmul %117, %107, %cst_43 {dimension_numbers = #tpu.dot_dimension_numbers<[1], [0], [0], [1], [0, 0, 1, 1], [], []>} : vector<8x8xf32>, vector<8x4xf32>, vector<8x4xf32> -> vector<8x4xf32>
    %119 = vector.extract_strided_slice %10 {offsets = [0, 28], sizes = [8, 4], strides = [1, 1]} : vector<8x32xf32> to vector<8x4xf32>
    %120 = vector.extract_strided_slice %15 {offsets = [0, 28], sizes = [8, 4], strides = [1, 1]} : vector<8x32xf32> to vector<8x4xf32>
    %121 = vector.extract_strided_slice %20 {offsets = [0, 28], sizes = [8, 4], strides = [1, 1]} : vector<8x32xf32> to vector<8x4xf32>
    %cst_44 = arith.constant dense<0.000000e+00> : vector<8x8xf32>
    %122 = tpu.matmul %119, %120, %cst_44 {dimension_numbers = #tpu.dot_dimension_numbers<[1], [1], [0], [0], [0, 0, 1, 0], [], []>} : vector<8x4xf32>, vector<8x4xf32>, vector<8x8xf32> -> vector<8x8xf32>
    %cst_45 = arith.constant dense<0xFF800000> : vector<8xf32>
    %123 = vector.multi_reduction <maximumf>, %122, %cst_45 [1] : vector<8x8xf32> to vector<8xf32>
    %124 = vector.shape_cast %123 : vector<8xf32> to vector<8x1xf32>
    %125 = vector.broadcast %124 : vector<8x1xf32> to vector<8x8xf32>
    %126 = arith.subf %122, %125 : vector<8x8xf32>
    %127 = math.exp %126 : vector<8x8xf32>
    %cst_46 = arith.constant dense<0.000000e+00> : vector<8xf32>
    %128 = vector.multi_reduction <add>, %127, %cst_46 [1] : vector<8x8xf32> to vector<8xf32>
    %129 = vector.shape_cast %128 : vector<8xf32> to vector<8x1xf32>
    %130 = vector.broadcast %129 : vector<8x1xf32> to vector<8x8xf32>
    %131 = arith.divf %127, %130 : vector<8x8xf32>
    %cst_47 = arith.constant dense<0.000000e+00> : vector<8x4xf32>
    %132 = tpu.matmul %131, %121, %cst_47 {dimension_numbers = #tpu.dot_dimension_numbers<[1], [0], [0], [1], [0, 0, 1, 1], [], []>} : vector<8x8xf32>, vector<8x4xf32>, vector<8x4xf32> -> vector<8x4xf32>
    %133 = tpu.concatenate %34, %48, %62, %76, %90, %104, %118, %132 in 1 : vector<8x4xf32>, vector<8x4xf32>, vector<8x4xf32>, vector<8x4xf32>, vector<8x4xf32>, vector<8x4xf32>, vector<8x4xf32>, vector<8x4xf32> -> vector<8x32xf32>
    %c0_48 = arith.constant 0 : index
    %c0_49 = arith.constant 0 : index
    %134 = vector.load %arg8[%c0_48, %c0_49] : memref<32x32xf32, #tpu.memory_space<vmem>>, vector<32x32xf32>
    %cst_50 = arith.constant dense<0.000000e+00> : vector<8x32xf32>
    %135 = tpu.matmul %133, %134, %cst_50 {dimension_numbers = #tpu.dot_dimension_numbers<[1], [0], [0], [1], [0, 0, 1, 1], [], []>} : vector<8x32xf32>, vector<32x32xf32>, vector<8x32xf32> -> vector<8x32xf32>
    %c0_51 = arith.constant 0 : index
    %c0_52 = arith.constant 0 : index
    %136 = vector.load %arg9[%c0_51, %c0_52] : memref<1x32xf32, #tpu.memory_space<vmem>>, vector<1x32xf32>
    %137 = vector.broadcast %136 : vector<1x32xf32> to vector<8x32xf32>
    %138 = arith.addf %135, %137 : vector<8x32xf32>
    %139 = arith.index_cast %arg0 : i32 to index
    %c0_53 = arith.constant 0 : index
    %c0_54 = arith.constant 0 : index
    %140 = vector.load %arg15[%139, %c0_53, %c0_54] : memref<2x8x32xf32, #tpu.memory_space<vmem>>, vector<1x8x32xf32>
    %141 = vector.shape_cast %140 : vector<1x8x32xf32> to vector<8x32xf32>
    %142 = vector.shape_cast %138 : vector<8x32xf32> to vector<1x8x32xf32>
    tpu.vector_store %arg15[%139, %c0_53, %c0_54], %142 {strides = array<i32>} : memref<2x8x32xf32, #tpu.memory_space<vmem>>, vector<1x8x32xf32>,
    %c0_55 = arith.constant 0 : index
    %c0_56 = arith.constant 0 : index
    %143 = vector.load %arg16[%c0_55, %c0_56] : memref<1x32xf32, #tpu.memory_space<vmem>>, vector<1x32xf32>
    %cst_57 = arith.constant dense<0.000000e+00> : vector<32xf32>
    %144 = vector.multi_reduction <add>, %138, %cst_57 [0] : vector<8x32xf32> to vector<32xf32>
    %145 = vector.shape_cast %144 : vector<32xf32> to vector<1x32xf32>
    %146 = arith.addf %143, %145 : vector<1x32xf32>
    %c0_58 = arith.constant 0 : index
    %c0_59 = arith.constant 0 : index
    %147 = vector.load %arg16[%c0_58, %c0_59] : memref<1x32xf32, #tpu.memory_space<vmem>>, vector<1x32xf32>
    tpu.vector_store %arg16[%c0_58, %c0_59], %146 {strides = array<i32>} : memref<1x32xf32, #tpu.memory_space<vmem>>, vector<1x32xf32>,
    %c0_60 = arith.constant 0 : index
    %c0_61 = arith.constant 0 : index
    %148 = vector.load %arg17[%c0_60, %c0_61] : memref<1x32xf32, #tpu.memory_space<vmem>>, vector<1x32xf32>
    %149 = arith.mulf %138, %138 : vector<8x32xf32>
    %cst_62 = arith.constant dense<0.000000e+00> : vector<32xf32>
    %150 = vector.multi_reduction <add>, %149, %cst_62 [0] : vector<8x32xf32> to vector<32xf32>
    %151 = vector.shape_cast %150 : vector<32xf32> to vector<1x32xf32>
    %152 = arith.addf %148, %151 : vector<1x32xf32>
    %c0_63 = arith.constant 0 : index
    %c0_64 = arith.constant 0 : index
    %153 = vector.load %arg17[%c0_63, %c0_64] : memref<1x32xf32, #tpu.memory_space<vmem>>, vector<1x32xf32>
    tpu.vector_store %arg17[%c0_63, %c0_64], %152 {strides = array<i32>} : memref<1x32xf32, #tpu.memory_space<vmem>>, vector<1x32xf32>,
    %c1_i32 = arith.constant 1 : i32
    %154 = arith.cmpi eq, %arg0, %c1_i32 : i32
    %155 = arith.extui %154 : i1 to i32
    %c0_i32_65 = arith.constant 0 : i32
    %156 = arith.cmpi ne, %155, %c0_i32_65 : i32
    scf.if %156 {
      %c0_66 = arith.constant 0 : index
      %c0_67 = arith.constant 0 : index
      %157 = vector.load %arg16[%c0_66, %c0_67] : memref<1x32xf32, #tpu.memory_space<vmem>>, vector<1x32xf32>
      %cst_68 = arith.constant 6.250000e-02 : f32
      %158 = vector.broadcast %cst_68 : f32 to vector<1x32xf32>
      %159 = arith.mulf %157, %158 : vector<1x32xf32>
      %c0_69 = arith.constant 0 : index
      %c0_70 = arith.constant 0 : index
      %160 = vector.load %arg17[%c0_69, %c0_70] : memref<1x32xf32, #tpu.memory_space<vmem>>, vector<1x32xf32>
      %cst_71 = arith.constant 6.250000e-02 : f32
      %161 = vector.broadcast %cst_71 : f32 to vector<1x32xf32>
      %162 = arith.mulf %160, %161 : vector<1x32xf32>
      %163 = arith.mulf %159, %159 : vector<1x32xf32>
      %164 = arith.subf %162, %163 : vector<1x32xf32>
      %c0_72 = arith.constant 0 : index
      %c0_73 = arith.constant 0 : index
      %c0_74 = arith.constant 0 : index
      %165 = vector.load %arg15[%c0_72, %c0_73, %c0_74] : memref<2x8x32xf32, #tpu.memory_space<vmem>>, vector<2x8x32xf32>
      %166 = vector.shape_cast %165 : vector<2x8x32xf32> to vector<16x32xf32>
      %167 = vector.broadcast %159 : vector<1x32xf32> to vector<16x32xf32>
      %168 = arith.subf %166, %167 : vector<16x32xf32>
      %cst_75 = arith.constant 9.99999974E-6 : f32
      %169 = vector.broadcast %cst_75 : f32 to vector<1x32xf32>
      %170 = arith.addf %164, %169 : vector<1x32xf32>
      %171 = math.rsqrt %170 : vector<1x32xf32>
      %172 = vector.broadcast %171 : vector<1x32xf32> to vector<16x32xf32>
      %173 = arith.mulf %168, %172 : vector<16x32xf32>
      %c0_76 = arith.constant 0 : index
      %c0_77 = arith.constant 0 : index
      %174 = vector.load %arg10[%c0_76, %c0_77] : memref<1x32xf32, #tpu.memory_space<vmem>>, vector<1x32xf32>
      %175 = vector.broadcast %174 : vector<1x32xf32> to vector<16x32xf32>
      %176 = arith.mulf %173, %175 : vector<16x32xf32>
      %c0_78 = arith.constant 0 : index
      %c0_79 = arith.constant 0 : index
      %177 = vector.load %arg11[%c0_78, %c0_79] : memref<1x32xf32, #tpu.memory_space<vmem>>, vector<1x32xf32>
      %178 = vector.broadcast %177 : vector<1x32xf32> to vector<16x32xf32>
      %179 = arith.addf %176, %178 : vector<16x32xf32>
      %cst_80 = arith.constant 5.000000e-01 : f32
      %180 = vector.broadcast %cst_80 : f32 to vector<16x32xf32>
      %181 = arith.mulf %180, %179 : vector<16x32xf32>
      %cst_81 = arith.constant 0.707106769 : f32
      %182 = vector.broadcast %cst_81 : f32 to vector<16x32xf32>
      %183 = arith.mulf %179, %182 : vector<16x32xf32>
      %184 = math.erf %183 : vector<16x32xf32>
      %cst_82 = arith.constant 1.000000e+00 : f32
      %185 = vector.broadcast %cst_82 : f32 to vector<16x32xf32>
      %186 = arith.addf %185, %184 : vector<16x32xf32>
      %187 = arith.mulf %181, %186 : vector<16x32xf32>
      %c0_83 = arith.constant 0 : index
      %c0_84 = arith.constant 0 : index
      %c0_85 = arith.constant 0 : index
      %188 = vector.load %arg1[%c0_83, %c0_84, %c0_85] : memref<2x8x32xf32, #tpu.memory_space<vmem>>, vector<2x8x32xf32>
      %189 = vector.shape_cast %188 : vector<2x8x32xf32> to vector<16x32xf32>
      %190 = arith.addf %187, %189 : vector<16x32xf32>
      %c0_86 = arith.constant 0 : index
      %c0_87 = arith.constant 0 : index
      %191 = vector.load %arg12[%c0_86, %c0_87] : memref<32x32xf32, #tpu.memory_space<vmem>>, vector<32x32xf32>
      %cst_88 = arith.constant dense<0.000000e+00> : vector<16x32xf32>
      %192 = tpu.matmul %190, %191, %cst_88 {dimension_numbers = #tpu.dot_dimension_numbers<[1], [0], [0], [1], [0, 0, 1, 1], [], []>} : vector<16x32xf32>, vector<32x32xf32>, vector<16x32xf32> -> vector<16x32xf32>
      %c0_89 = arith.constant 0 : index
      %c0_90 = arith.constant 0 : index
      %193 = vector.load %arg13[%c0_89, %c0_90] : memref<32x32xf32, #tpu.memory_space<vmem>>, vector<32x32xf32>
      %cst_91 = arith.constant dense<0.000000e+00> : vector<16x32xf32>
      %194 = tpu.matmul %192, %193, %cst_91 {dimension_numbers = #tpu.dot_dimension_numbers<[1], [0], [0], [1], [0, 0, 1, 1], [], []>} : vector<16x32xf32>, vector<32x32xf32>, vector<16x32xf32> -> vector<16x32xf32>
      %195 = arith.addf %194, %190 : vector<16x32xf32>
      %c0_92 = arith.constant 0 : index
      %c0_93 = arith.constant 0 : index
      %196 = vector.load %arg14[%c0_92, %c0_93] : memref<16x32xf32, #tpu.memory_space<vmem>>, vector<16x32xf32>
      tpu.vector_store %arg14[%c0_92, %c0_93], %195 {strides = array<i32>} : memref<16x32xf32, #tpu.memory_space<vmem>>, vector<16x32xf32>,
    } else {
    }
    return
  }
  func.func @transform_0(%arg0: i32) -> (i32, i32, i32) {
    %c0_i32 = arith.constant 0 : i32
    %c0_i32_0 = arith.constant 0 : i32
    %c0_i32_1 = arith.constant 0 : i32
    %c0_i32_2 = arith.constant 0 : i32
    return %c0_i32, %c0_i32_0, %c0_i32_1 : i32, i32, i32
  }
  func.func @transform_1(%arg0: i32) -> (i32, i32) {
    %c0_i32 = arith.constant 0 : i32
    %c0_i32_0 = arith.constant 0 : i32
    %c0_i32_1 = arith.constant 0 : i32
    return %c0_i32, %c0_i32_0 : i32, i32
  }
  func.func @transform_2(%arg0: i32) -> (i32, i32) {
    %c0_i32 = arith.constant 0 : i32
    %c0_i32_0 = arith.constant 0 : i32
    %c0_i32_1 = arith.constant 0 : i32
    return %c0_i32, %c0_i32_0 : i32, i32
  }
  func.func @transform_3(%arg0: i32) -> (i32, i32) {
    %c0_i32 = arith.constant 0 : i32
    %c0_i32_0 = arith.constant 0 : i32
    %c0_i32_1 = arith.constant 0 : i32
    return %c0_i32, %c0_i32_0 : i32, i32
  }
  func.func @transform_4(%arg0: i32) -> (i32, i32) {
    %c0_i32 = arith.constant 0 : i32
    %c0_i32_0 = arith.constant 0 : i32
    %c0_i32_1 = arith.constant 0 : i32
    return %c0_i32, %c0_i32_0 : i32, i32
  }
  func.func @transform_5(%arg0: i32) -> (i32, i32) {
    %c0_i32 = arith.constant 0 : i32
    %c0_i32_0 = arith.constant 0 : i32
    %c0_i32_1 = arith.constant 0 : i32
    return %c0_i32, %c0_i32_0 : i32, i32
  }
  func.func @transform_6(%arg0: i32) -> (i32, i32) {
    %c0_i32 = arith.constant 0 : i32
    %c0_i32_0 = arith.constant 0 : i32
    %c0_i32_1 = arith.constant 0 : i32
    return %c0_i32, %c0_i32_0 : i32, i32
  }
  func.func @transform_7(%arg0: i32) -> (i32, i32) {
    %c0_i32 = arith.constant 0 : i32
    %c0_i32_0 = arith.constant 0 : i32
    %c0_i32_1 = arith.constant 0 : i32
    return %c0_i32, %c0_i32_0 : i32, i32
  }
  func.func @transform_8(%arg0: i32) -> (i32, i32) {
    %c0_i32 = arith.constant 0 : i32
    %c0_i32_0 = arith.constant 0 : i32
    %c0_i32_1 = arith.constant 0 : i32
    return %c0_i32, %c0_i32_0 : i32, i32
  }
  func.func @transform_9(%arg0: i32) -> (i32, i32) {
    %c0_i32 = arith.constant 0 : i32
    %c0_i32_0 = arith.constant 0 : i32
    %c0_i32_1 = arith.constant 0 : i32
    return %c0_i32, %c0_i32_0 : i32, i32
  }
  func.func @transform_10(%arg0: i32) -> (i32, i32) {
    %c0_i32 = arith.constant 0 : i32
    %c0_i32_0 = arith.constant 0 : i32
    %c0_i32_1 = arith.constant 0 : i32
    return %c0_i32, %c0_i32_0 : i32, i32
  }
  func.func @transform_11(%arg0: i32) -> (i32, i32) {
    %c0_i32 = arith.constant 0 : i32
    %c0_i32_0 = arith.constant 0 : i32
    %c0_i32_1 = arith.constant 0 : i32
    return %c0_i32, %c0_i32_0 : i32, i32
  }
  func.func @transform_12(%arg0: i32) -> (i32, i32) {
    %c0_i32 = arith.constant 0 : i32
    %c0_i32_0 = arith.constant 0 : i32
    %c0_i32_1 = arith.constant 0 : i32
    return %c0_i32, %c0_i32_0 : i32, i32
  }
  func.func @transform_13(%arg0: i32) -> (i32, i32) {
    %c0_i32 = arith.constant 0 : i32
    %c0_i32_0 = arith.constant 0 : i32
    %c0_i32_1 = arith.constant 0 : i32
    return %c0_i32, %c0_i32_0 : i32, i32
  }
}

</mosaic_0001>

<bundles_post_ra>
// kernel: tpu_custom_call.1
= control target key start
LH: loop header
LB: loop body
LE: loop exit
PB: predicated region body
PF: predicated region fallthrough
CT: control target
= control target key end

     0   :  { %s3758_s0 = inlined_call_operand.hbm [shape: f32[2,8,32], index: 0, kind: input, shape index: {}]   ;;  %s3759_s1 = inlined_call_operand.hbm [shape: f32[32,32], index: 1, kind: input, shape index: {}]   ;;  %s3760_s2 = inlined_call_operand.vmem [shape: f32[1,32], index: 2, kind: input, shape index: {}]   ;;  %s3761_s3 = inlined_call_operand.hbm [shape: f32[32,32], index: 3, kind: input, shape index: {}]   ;;  %s3762_s4 = inlined_call_operand.vmem [shape: f32[1,32], index: 4, kind: input, shape index: {}]   ;;  %s3763_s5 = inlined_call_operand.hbm [shape: f32[32,32], index: 5, kind: input, shape index: {}]   ;;  %s3764_s6 = inlined_call_operand.vmem [shape: f32[1,32], index: 6, kind: input, shape index: {}]   ;;  %s3765_s7 = inlined_call_operand.hbm [shape: f32[32,32], index: 7, kind: input, shape index: {}]   ;;  %s3766_s8 = inlined_call_operand.vmem [shape: f32[1,32], index: 8, kind: input, shape index: {}]   ;;  %s3767_s9 = inlined_call_operand.vmem [shape: f32[1,32], index: 9, kind: input, shape index: {}]   ;;  %s3768_s10 = inlined_call_operand.vmem [shape: f32[1,32], index: 10, kind: input, shape index: {}]   ;;  %s3769_s11 = inlined_call_operand.vmem [shape: f32[32,32], index: 11, kind: input, shape index: {}]   ;;  %s3770_s12 = inlined_call_operand.hbm [shape: f32[32,32], index: 12, kind: input, shape index: {}]   ;;  %s3771_s13 = inlined_call_operand.hbm [shape: f32[16,32], index: 13, kind: output, shape index: {}]  }
   0x1   :  { %3776 = sst [smem:[#allocation23_spill]] %s3768_s10 }
   0x2   :  { %3777 = sst [smem:[#allocation24_spill]] %s3771_s13 }
   0x3   :  { %18 = vsyncpa [#allocation6], 0 }
   0x4   :  { %19 = vsyncpa [#allocation9], 0 }
   0x5   :  { %20 = vsyncpa [#allocation12], 0 }
   0x6   :  { %21 = vsyncpa [#allocation15], 0 }
   0x7   :  { %22 = vsyncpa [#allocation7], 0  ;;  %s3317_s25 = smov 0  }
   0x8 LB: > { %3778 = sst [smem:[#allocation22_spill]] %s3217_s25  ;;  %s3323_s26 = sadd.s32 4294967295, %s3217_s25   ;;  %s3217_s25 = sphi %s3317_s25, %s28_s25  }
   0x9   : > { %p2553_p0 = scmp.ge.s32.totalorder %s3217_s25, 1  ;;  %p327_p1 = scmp.lt.s32.totalorder %s3217_s25, 3 }
   0xa   : > { %p3774_p3 = scmp.eq.s32.totalorder %s3323_s26, 0  ;;  %s3219_s28 = smov [#allocation8]  }
   0xb   : > { %p3329_p4 = pnand %p2553_p0, %p327_p1  ;;  %s352_s29 = sshll.u32 %s3219_s28, 4  ;;  %s3333_s29 = int_to_ptr.vmem [resolvable:$true] %s352_s29 }
   0xc   : > { %s3220_s30 = smov [#allocation11]   ;;  %s3221_s16 = smov [#allocation5]  }
   0xd   : > { %s3779_s27 = scalar_select %p3329_p4, 1, 0 }
   0xe   : > { %p2890_p5 = pneg %p3329_p4  ;;  %s384_s14 = sshll.u32 %s3220_s30, 4  ;;  %s3337_s14 = int_to_ptr.vmem [resolvable:$true] %s384_s14 }
   0xf   : > { %s339_s17 = sshll.u32 %s3221_s16, 4  ;;  %s3222_s18 = smov [#allocation10]   ;;  %s3345_s17 = int_to_ptr.vmem [resolvable:$true] %s339_s17 }
  0x10   : > { %p3341_p6 = pnand %p3774_p3, %p2890_p5  ;;  %s3347_s19 = sshll.u32 %s3222_s18, 4  ;;  %s369_s19 = int_to_ptr.vmem [resolvable:$true] %s3347_s19 }
  0x11   : > { %s2997_s22 = scalar_lea.hbm %s3759_s1, 512 }
  0x12   : > { %p2998_p7 = scmp.ne.s32.totalorder %s3759_s1, %s2997_s22  ;;  %p3357_p8 = pneg %p3341_p6 }
  0x13   : > { %p3004_p11 = scmp.lt.u32.totalorder %s2997_s22, %s3759_s1 }
  0x14   : > { %p3000_p9 = pnand %p3357_p8, %p2998_p7 }
  0x16   : > { %p3001_p10 = pneg %p3000_p9 }
  0x18   : > { %p3006_p12 = pnand %p3004_p11, %p3001_p10 }
  0x1a   : > { %3009 = shalt.err (!%p3006_p12)
}
  0x1b   : > { %s3010_s18 = scalar_lea.vmem %s3333_s29, 512  ;;  %p3018_p5 = scmp.lt.s32.totalorder %s3333_s29, %s3333_s29 }
  0x1c   : > { %p3011_p13 = scmp.ne.s32.totalorder %s3333_s29, %s3010_s18  ;;  %p3019_p2 = scmp.lt.s32.totalorder %s3010_s18, %s3010_s18 }
  0x1e   : > { %p3013_p0 = pnand %p3011_p13, %p3357_p8  ;;  %p3020_p7 = por %p3019_p2, %p3018_p5 }
  0x20   : > { %p3014_p1 = pneg %p3013_p0 }
  0x22   : > { %p3021_p9 = pnand %p3020_p7, %p3014_p1 }
  0x24   : > { %3024 = shalt.err (!%p3021_p9)
}
  0x25   : > { %s3223_s20 = smov 128   ;;  %s3224_s21 = smov 8  }
  0x26   : > { %2896 = dma.hbm_to_vmem [thread:$0]  (!%p3341_p6), %s3759_s1, 512, %s3333_s29, [#allocation9], %s3223_s20, %s3223_s20, %s3224_s21  }
  0x27   : > { %s3025_s16 = scalar_lea.hbm %s3763_s5, 512 }
  0x28   : > { %p3026_p2 = scmp.ne.s32.totalorder %s3763_s5, %s3025_s16  ;;  %p3032_p12 = scmp.lt.u32.totalorder %s3025_s16, %s3763_s5 }
  0x2a   : > { %p3028_p10 = pnand %p3026_p2, %p3357_p8 }
  0x2c   : > { %p3029_p11 = pneg %p3028_p10 }
  0x2e   : > { %p3034_p13 = pnand %p3032_p12, %p3029_p11 }
  0x30   : > { %3037 = shalt.err (!%p3034_p13)
}
  0x31   : > { %s3038_s29 = scalar_lea.vmem %s3337_s14, 512  ;;  %p3046_p7 = scmp.lt.s32.totalorder %s3337_s14, %s3337_s14 }
  0x32   : > { %p3039_p0 = scmp.ne.s32.totalorder %s3337_s14, %s3038_s29  ;;  %p3047_p9 = scmp.lt.s32.totalorder %s3038_s29, %s3038_s29 }
  0x34   : > { %p3041_p1 = pnand %p3039_p0, %p3357_p8  ;;  %p3048_p2 = por %p3047_p9, %p3046_p7 }
  0x36   : > { %p3042_p5 = pneg %p3041_p1 }
  0x38   : > { %p3049_p10 = pnand %p3048_p2, %p3042_p5 }
  0x3a   : > { %3052 = shalt.err (!%p3049_p10)
}
  0x3b   : > { %2902 = dma.hbm_to_vmem [thread:$0]  (!%p3341_p6), %s3763_s5, 512, %s3337_s14, [#allocation12], %s3223_s20, %s3223_s20, %s3224_s21  }
  0x3c   : > { %s3053_s23 = scalar_lea.hbm %s3758_s0, 256 }
  0x3d   : > { %p3054_p11 = scmp.ne.s32.totalorder %s3758_s0, %s3053_s23  ;;  %p3060_p0 = scmp.lt.u32.totalorder %s3053_s23, %s3758_s0 }
  0x3f   : > { %p3056_p12 = pnand %p3054_p11, %p3357_p8 }
  0x41   : > { %p3057_p13 = pneg %p3056_p12 }
  0x43   : > { %p3062_p1 = pnand %p3060_p0, %p3057_p13 }
  0x45   : > { %3065 = shalt.err (!%p3062_p1)
}
  0x46   : > { %s3066_s14 = scalar_lea.vmem %s3345_s17, 256  ;;  %p3074_p2 = scmp.lt.s32.totalorder %s3345_s17, %s3345_s17 }
  0x47   : > { %p3067_p5 = scmp.ne.s32.totalorder %s3345_s17, %s3066_s14  ;;  %p3075_p10 = scmp.lt.s32.totalorder %s3066_s14, %s3066_s14 }
  0x49   : > { %p3069_p7 = pnand %p3067_p5, %p3357_p8  ;;  %p3076_p11 = por %p3075_p10, %p3074_p2 }
  0x4b   : > { %p3070_p9 = pneg %p3069_p7 }
  0x4d   : > { %p3077_p12 = pnand %p3076_p11, %p3070_p9 }
  0x4f   : > { %3080 = shalt.err (!%p3077_p12)
}
  0x50   : > { %2893 = dma.hbm_to_vmem [thread:$0]  (!%p3341_p6), %s3758_s0, 256, %s3345_s17, [#allocation6], %s3223_s20, %s3223_s20, %s3224_s21  }
  0x51   : > { %s3081_s22 = scalar_lea.hbm %s3761_s3, 512 }
  0x52   : > { %p3082_p13 = scmp.ne.s32.totalorder %s3761_s3, %s3081_s22  ;;  %p3088_p5 = scmp.lt.u32.totalorder %s3081_s22, %s3761_s3 }
  0x54   : > { %p3084_p0 = pnand %p3082_p13, %p3357_p8 }
  0x56   : > { %p3085_p1 = pneg %p3084_p0 }
  0x58   : > { %p3090_p7 = pnand %p3088_p5, %p3085_p1 }
  0x5a   : > { %3093 = shalt.err (!%p3090_p7)
}
  0x5b   : > { %s3094_s18 = scalar_lea.vmem %s369_s19, 512  ;;  %p3102_p11 = scmp.lt.s32.totalorder %s369_s19, %s369_s19 }
  0x5c   : > { %p3095_p9 = scmp.ne.s32.totalorder %s369_s19, %s3094_s18  ;;  %p3103_p12 = scmp.lt.s32.totalorder %s3094_s18, %s3094_s18 }
  0x5e   : > { %p3097_p2 = pnand %p3095_p9, %p3357_p8  ;;  %p3104_p3 = por %p3103_p12, %p3102_p11 }
  0x60   : > { %p3098_p10 = pneg %p3097_p2 }
  0x62   : > { %p3105_p4 = pnand %p3104_p3, %p3098_p10 }
  0x64   : > { %3108 = shalt.err (!%p3105_p4)
}
  0x65   : > { %2899 = dma.hbm_to_vmem [thread:$0]  (!%p3341_p6), %s3761_s3, 512, %s369_s19, [#allocation9], %s3223_s20, %s3223_s20, %s3224_s21  }
  0x66   : > { %s3225_s29 = smov [#allocation13]   ;;  %s3226_s13 = smov [#allocation14]  }
  0x67   : > { %s400_s10 = sshll.u32 %s3225_s29, 4  ;;  %s425_s25 = sshll.u32 %s3226_s13, 4  ;;  %s401_s10 = int_to_ptr.vmem [resolvable:$true] %s400_s10  ;;  %s426_s25 = int_to_ptr.vmem [resolvable:$true] %s425_s25 }
  0x68   : > { %s3109_s24 = scalar_lea.hbm %s3765_s7, 512 }
  0x69   : > { %p3110_p3 = scmp.ne.s32.totalorder %s3765_s7, %s3109_s24  ;;  %p3116_p0 = scmp.lt.u32.totalorder %s3109_s24, %s3765_s7 }
  0x6b   : > { %p3112_p4 = pnand %p3110_p3, %p3357_p8 }
  0x6d   : > { %p3113_p13 = pneg %p3112_p4 }
  0x6f   : > { %p3118_p1 = pnand %p3116_p0, %p3113_p13 }
  0x71   : > { %3121 = shalt.err (!%p3118_p1)
}
  0x72   : > { %s3122_s19 = scalar_lea.vmem %s401_s10, 512  ;;  %p3130_p2 = scmp.lt.s32.totalorder %s401_s10, %s401_s10 }
  0x73   : > { %p3123_p5 = scmp.ne.s32.totalorder %s401_s10, %s3122_s19  ;;  %p3131_p10 = scmp.lt.s32.totalorder %s3122_s19, %s3122_s19 }
  0x75   : > { %p3125_p7 = pnand %p3123_p5, %p3357_p8  ;;  %p3132_p11 = por %p3131_p10, %p3130_p2 }
  0x77   : > { %p3126_p9 = pneg %p3125_p7 }
  0x79   : > { %p3133_p12 = pnand %p3132_p11, %p3126_p9 }
  0x7b   : > { %3136 = shalt.err (!%p3133_p12)
}
  0x7c   : > { %2905 = dma.hbm_to_vmem [thread:$0]  (!%p3341_p6), %s3765_s7, 512, %s401_s10, [#allocation12], %s3223_s20, %s3223_s20, %s3224_s21  }
  0x7d   : > { %s3137_s23 = scalar_lea.hbm %s3770_s12, 512 }
  0x7e   : > { %p3138_p3 = scmp.ne.s32.totalorder %s3770_s12, %s3137_s23  ;;  %p3144_p0 = scmp.lt.u32.totalorder %s3137_s23, %s3770_s12 }
  0x80   : > { %p3140_p4 = pnand %p3138_p3, %p3357_p8 }
  0x82   : > { %p3141_p13 = pneg %p3140_p4 }
  0x84   : > { %p3146_p1 = pnand %p3144_p0, %p3141_p13 }
  0x86   : > { %3149 = shalt.err (!%p3146_p1)
}
  0x87   : > { %s3150_s17 = scalar_lea.vmem %s426_s25, 512  ;;  %p3158_p2 = scmp.lt.s32.totalorder %s426_s25, %s426_s25 }
  0x88   : > { %p3151_p5 = scmp.ne.s32.totalorder %s426_s25, %s3150_s17  ;;  %p3159_p10 = scmp.lt.s32.totalorder %s3150_s17, %s3150_s17 }
  0x8a   : > { %p3153_p7 = pnand %p3151_p5, %p3357_p8  ;;  %p3160_p11 = por %p3159_p10, %p3158_p2 }
  0x8c   : > { %p3154_p9 = pneg %p3153_p7 }
  0x8e   : > { %p3161_p12 = pnand %p3160_p11, %p3154_p9 }
  0x90   : > { %3164 = shalt.err (!%p3161_p12)
}
  0x91   : > { %2908 = dma.hbm_to_vmem [thread:$0]  (!%p3341_p6), %s3770_s12, 512, %s426_s25, [#allocation15], %s3223_s20, %s3223_s20, %s3224_s21  }
  0x92   : > { %p3782_p3 = scmp.ne.s32.totalorder %s3779_s27, 0 }
  0x93   : > { %p3783_p8 = scmp.eq.s32.totalorder (!%p3782_p3), %s3323_s26, 0 }
  0x94   : > { %441 = sbr.rel (%p3782_p3) target bundleno = 2619 (0xa3b), region = 72 }
  0x9b   : > { %3196 = dma.done.wait (%p3783_p8), [#allocation6], 256   ;;  %p3784_p4 = pmov %p3783_p8 }
  0x9d   : > { %3198 = vsyncadd (%p3784_p4), [#allocation6], 4294967040  ;;  %p3785_p13 = pmov %p3784_p4 }
  0x9e   : > { %p3786_p0 = pmov %p3784_p4 }
  0x9f   : > { %3200 = dma.done.wait (%p3785_p13), [#allocation9], 1024  }
  0xa0   : > { %3202 = vsyncadd (%p3786_p0), [#allocation9], 4294966272  ;;  %p3787_p1 = pmov %p3786_p0 }
  0xa1   : > { %p3788_p6 = pmov %p3786_p0 }
  0xa2   : > { %3204 = dma.done.wait (%p3787_p1), [#allocation12], 1024  }
  0xa3   : > { %3206 = vsyncadd (%p3788_p6), [#allocation12], 4294966272  ;;  %p3789_p5 = pmov %p3786_p0 }
  0xa4   : > { %p3790_p7 = pmov %p3786_p0 }
  0xa5   : > { %3208 = dma.done.wait (%p3789_p5), [#allocation15], 512  }
  0xa6   : > { %3210 = vsyncadd (%p3790_p7), [#allocation15], 4294966784  ;;  %p3791_p9 = scmp.ne.s32.totalorder %s3323_s26, 0 }
  0xa7   : > { %vm499_vm0 = vcmask (!%p3791_p9), 253952   ;;  %v3227_v0 = vmov (!%p3791_p9), 0.0  }
  0xa8   : > { %498 = sbr.rel (%p3791_p9) target bundleno = 175 (0xaf), region = 100  ;;  %500 = vst.msk [vmem:[#allocation3] sm:$0x1] (!%p3791_p9), %vm499_vm0, %v3227_v0  ;;  %501 = vst.msk [vmem:[#allocation4] sm:$0x1] (!%p3791_p9), %vm499_vm0, %v3227_v0 }
  0xaf PF: > { %v590_v1 = vld [vmem:[#allocation10] sm:$0xff]  ;;  %v591_v2 = vld [vmem:[#allocation10 + $0x8] sm:$0xff]  ;;  %v3228_v4 = vmov 0.0|0.0   ;;  %v592_v7 = vld [vmem:[#allocation10 + $0x10] sm:$0xff]  ;;  %s2568_s27 = sshll.u32 %s3323_s26, 3  ;;  %vm3229_vm1 = vmmov 0  }
  0xb0   : > { %v505_v3 = vld [vmem:[#allocation8] sm:$0xff]  ;;  %2828 = vmatprep.subr.bf16.mxu1 %v3228_v4  ;;  %v2829_v5 = vpack.c.bf16 %v591_v2, %v590_v1  ;;  %2822 = vmatprep.subr.bf16.mxu0 %v3228_v4  ;;  %v506_v6 = vld [vmem:[#allocation8 + $0x8] sm:$0xff]  ;;  %v593_v8 = vld [vmem:[#allocation10 + $0x18] sm:$0xff]  ;;  %v3230_v12 = vmov 0.0   ;;  %s503_s15 = scalar_lea.vmem [#allocation5], %s2568_s27  ;;  %vm516_vm2 = vcmask 261120  }
  0xb1   : > { %v2823_v9 = vpack.c.bf16 %v506_v6, %v505_v3  ;;  %v507_v10 = vld [vmem:[#allocation8 + $0x10] sm:$0xff]  ;;  %v508_v11 = vld [vmem:[#allocation8 + $0x18] sm:$0xff]  ;;  %2695 = vmatprep.mubr.msk.f32.mxu1 %vm3229_vm1, %v3230_v12  ;;  %2684 = vmatprep.mubr.msk.f32.mxu0 %vm3229_vm1, %v3230_v12  ;;  %v2832_v13 = vpack.c.bf16 %v593_v8, %v592_v7  ;;  %vm752_vm3 = vcmask 31744   ;;  %s3231_s14 = smov 124   ;;  %s3232_s29 = smov 120   ;;  %v671_v24 = vld [vmem:[#allocation11] sm:$0xff] }
  0xb2   : > { %2830 = vmatpush3.bf16.msra.mxu1 %v2829_v5  ;;  %v2826_v14 = vpack.c.bf16 %v508_v11, %v507_v10  ;;  %v504_v15 = vld [vmem:[%s503_s15] sm:$0xff]  ;;  %s3233_s13 = smov 116   ;;  %s3234_s22 = smov 112   ;;  %v672_v25 = vld [vmem:[#allocation11 + $0x8] sm:$0xff]  ;;  %v673_v26 = vld [vmem:[#allocation11 + $0x10] sm:$0xff]  ;;  %vm829_vm4 = vcmask 64512  }
  0xb3   : > { %2824 = vmatpush3.bf16.msra.mxu0 %v2823_v9  ;;  %2831 = vmatprep.subr.bf16.mxu1 %v3228_v4  ;;  %v2571_v16 = vld [vmem:[%s3762_s4] ss:$0 sm:$0xff]  ;;  %s3235_s23 = smov 108   ;;  %s3236_s24 = smov 104   ;;  %v2835_v27 = vpack.c.bf16 %v672_v25, %v671_v24  ;;  %vm2100_vm5 = vcmask 97280   ;;  %vm2102_vm6 = vcmask 130048  }
  0xb4   : > { %2825 = vmatprep.subr.bf16.mxu0 %v3228_v4  ;;  %v2569_v17 = vld [vmem:[%s3760_s2] ss:$0 sm:$0xff]  ;;  %s3237_s30 = smov 100   ;;  %s3238_s17 = smov 4   ;;  %vm2104_vm7 = vcmask 162816   ;;  %vm2106_vm8 = vcmask 195584  }
  0xb5   : > { %v674_v28 = vld [vmem:[#allocation11 + $0x18] sm:$0xff]  ;;  %s3239_s10 = smov 8   ;;  %s3240_s19 = smov 12   ;;  %vm2108_vm9 = vcmask 228352   ;;  %vm2205_vm10 = vcmask 253952  }
  0xb6   : > { %2833 = vmatpush3.bf16.msra.mxu1 %v2832_v13  ;;  %v2838_v29 = vpack.c.bf16 %v674_v28, %v673_v26  ;;  %v2573_v38 = vld [vmem:[%s3764_s6] ss:$0 sm:$0xff]  ;;  %s3241_s15 = smov 16   ;;  %s3242_s28 = smov 20  }
  0xb7   : > { %2827 = vmatpush3.bf16.msra.mxu0 %v2826_v14  ;;  %2709 = vmatprep.subr.mxu1 %v3230_v12  ;;  %s3243_s20 = smov 24   ;;  %s3244_s21 = smov 28  }
  0xb8   : > { %2834 = vmatprep.subr.bf16.mxu0 %v3228_v4  ;;  %p2601_p2 = scmp.ne.s32.totalorder %s3323_s26, 1 }
  0xb9   : > { %2696 = vmatmul.mubr.msk.f32.vlgmr.msra.gmra.mrb[0].mxu1 %vm516_vm2, %v504_v15 }
  0xba   : > { %2685 = vmatmul.mubr.msk.f32.vlgmr.msra.gmra.mrb[0].mxu0 %vm516_vm2, %v504_v15  ;;  %2711 = vmatprep.mubr.msk.f32.mxu1 %vm3229_vm1, %v3230_v12 }
  0xbb   : > { %2706 = vmatprep.mubr.msk.f32.mxu0 %vm3229_vm1, %v3230_v12  ;;  %2836 = vmatpush3.bf16.msra.mxu0 %v2835_v27 }
  0xbc   : > { %2837 = vmatprep.subr.bf16.mxu0 %v3228_v4 }
  0xbf   : > { %2839 = vmatpush3.bf16.msra.mxu0 %v2838_v29 }
  0xc0   : > { %2729 = vmatprep.subr.mxu0 %v3230_v12 }
  0xc2   : > { %2707 = vmatmul.mubr.msk.f32.vlgmr.msra.gmra.mrb[2].mxu0 %vm516_vm2, %v504_v15 }
  0xc3   : > { %2731 = vmatprep.mubr.msk.f32.mxu0 %vm3229_vm1, %v3230_v12 }
 0x18c   : > { %v667_v18 = vpop.f32.mrb[0].mxu1 }
 0x18d   : > { %v668_v19 = vadd.f32 %v2571_v16, %v667_v18  ;;  %v2697_v20 = vpop.f32.mrb[1].mxu1  ;;  %v586_v21 = vpop.f32.mrb[0].mxu0 }
 0x18e   : > { %v587_v22 = vadd.f32 %v2569_v17, %v586_v21  ;;  %v2686_v23 = vpop.f32.mrb[1].mxu0 }
 0x18f   : > { %916 = vrot.lane.b32.xlu1 %v668_v19, %s3231_s14  ;;  %2710 = vmatpush3.xpose.msk.msra.mxu1 %vm752_vm3, %v668_v19 }
 0x190   : > { %2714 = vmatprep.subr.mxu1 %v3230_v12 }
 0x192   : > { %2712 = vmatmul.mubr.msk.f32.vlgmr.msra.gmra.mrb[2].mxu1 %vm752_vm3, %v587_v22 }
 0x193   : > { %914 = vrot.lane.b32.xlu1 %v587_v22, %s3231_s14  ;;  %2716 = vmatprep.mubr.msk.f32.mxu1 %vm3229_vm1, %v3230_v12 }
 0x195   : > { %v748_v39 = vpop.f32.mrb[2].mxu0 }
 0x196   : > { %v3567_v40 = vadd.f32 %v2573_v38, %v748_v39  ;;  %v2708_v41 = vpop.f32.mrb[3].mxu0 }
 0x197   : > { %1080 = vrot.lane.b32.xlu1 %v587_v22, %s3232_s29 }
 0x198   : > { %2715 = vmatpush3.msra.mxu1 %v3567_v40 }
 0x199   : > { %2719 = vmatprep.subr.mxu1 %v3230_v12 }
 0x19b   : > { %1247 = vrot.lane.b32.xlu1 %v668_v19, %s3233_s13 }
 0x19f   : > { %1245 = vrot.lane.b32.xlu1 %v587_v22, %s3233_s13 }
 0x1a3   : > { %1412 = vrot.lane.b32.xlu1 %v668_v19, %s3234_s22 }
 0x1a7   : > { %1410 = vrot.lane.b32.xlu1 %v587_v22, %s3234_s22 }
 0x1ab   : > { %1577 = vrot.lane.b32.xlu1 %v668_v19, %s3235_s23 }
 0x1af   : > { %1742 = vrot.lane.b32.xlu1 %v668_v19, %s3236_s24 }
 0x1b3   : > { %1907 = vrot.lane.b32.xlu1 %v668_v19, %s3237_s30 }
 0x201   : > { %v917_v42 = vpop.permute.xlu1 %916 }
 0x205   : > { %v915_v43 = vpop.permute.xlu1 %914 }
 0x209   : > { %v1081_v44 = vpop.permute.xlu1 %1080 }
 0x20d   : > { %v1248_v45 = vpop.permute.xlu1 %1247 }
 0x211   : > { %v1246_v46 = vpop.permute.xlu1 %1245 }
 0x215   : > { %v1413_v47 = vpop.permute.xlu1 %1412 }
 0x219   : > { %v1411_v50 = vpop.permute.xlu1 %1410 }
 0x21d   : > { %v1578_v52 = vpop.permute.xlu1 %1577 }
 0x221   : > { %v1743_v55 = vpop.permute.xlu1 %1742 }
 0x225   : > { %v1908_v57 = vpop.permute.xlu1 %1907 }
 0x265   : > { %v825_v30 = vpop.f32.mrb[2].mxu1 }
 0x266   : > { %v2713_v31 = vpop.f32.mrb[3].mxu1  ;;  %v830_v32 = vsel %vm829_vm4, %v825_v30, -inf }
 0x267   : > { %831 = vmax.xlane.f32.xlu0 %v830_v32 }
 0x2f4   : > { %v832_v33 = vpop.xlane.xlu0 %831 }
 0x2f5   : > { %v833_v34 = vsub.f32 %v825_v30, %v832_v33 }
 0x2f7   : > { %v834_v35 = vmul.f32 1.442695, %v833_v34 }
 0x2f9   : > { %2959 = vpow2.f32 %v834_v35 }
 0x303   : > { %v2960_v36 = vpop.eup %2959 }
 0x304   : > { %v836_v37 = vsel %vm829_vm4, %v2960_v36, 0.0 }
 0x305   : > { %837 = vadd.xlane.f32.xlu0 %v836_v37 }
 0x31b   : > { %1082 = vrot.lane.b32.xlu0 %v668_v19, %s3232_s29 }
 0x31f   : > { %1575 = vrot.lane.b32.xlu0 %v587_v22, %s3235_s23 }
 0x323   : > { %1740 = vrot.lane.b32.xlu0 %v587_v22, %s3236_s24 }
 0x327   : > { %1905 = vrot.lane.b32.xlu0 %v587_v22, %s3237_s30 }
 0x392   : > { %v838_v48 = vpop.xlane.xlu0 %837 }
 0x393   : > { %2961 = vrcp.f32 %v838_v48 }
 0x396   : > { %v1083_v49 = vpop.permute.xlu0 %1082 }
 0x397   : > { %2730 = vmatpush3.xpose.msk.msra.mxu0 %vm752_vm3, %v1083_v49 }
 0x398   : > { %2739 = vmatprep.subr.mxu0 %v3230_v12 }
 0x39a   : > { %2732 = vmatmul.mubr.msk.f32.vlgmr.msra.gmra.mrb[4].mxu0 %vm752_vm3, %v1081_v44  ;;  %v1576_v54 = vpop.permute.xlu0 %1575 }
 0x39b   : > { %2740 = vmatpush3.xpose.msk.msra.mxu0 %vm752_vm3, %v1248_v45  ;;  %2741 = vmatprep.mubr.msk.f32.mxu0 %vm3229_vm1, %v3230_v12 }
 0x39c   : > { %2749 = vmatprep.subr.mxu0 %v3230_v12 }
 0x39d   : > { %v2962_v51 = vpop.eup %2961 }
 0x39e   : > { %v840_v53 = vmul.f32 %v2962_v51, %v2960_v36  ;;  %2742 = vmatmul.mubr.msk.f32.vlgmr.msra.gmra.mrb[6].mxu0 %vm752_vm3, %v1246_v46  ;;  %v1741_v56 = vpop.permute.xlu0 %1740 }
 0x39f   : > { %2750 = vmatpush3.xpose.msk.msra.mxu0 %vm752_vm3, %v1413_v47  ;;  %2751 = vmatprep.mubr.msk.f32.mxu0 %vm3229_vm1, %v3230_v12 }
 0x3a0   : > { %2717 = vmatmul.mubr.msk.f32.vlgmr.msra.gmra.mrb[4].mxu1 %vm829_vm4, %v840_v53  ;;  %2759 = vmatprep.subr.mxu0 %v3230_v12 }
 0x3a1   : > { %2720 = vmatpush3.xpose.msk.msra.mxu1 %vm752_vm3, %v917_v42  ;;  %2721 = vmatprep.mubr.msk.f32.mxu1 %vm3229_vm1, %v3230_v12 }
 0x3a2   : > { %2752 = vmatmul.mubr.msk.f32.vlgmr.msra.gmra.mrb[8].mxu0 %vm752_vm3, %v1411_v50  ;;  %2724 = vmatprep.subr.mxu1 %v3230_v12  ;;  %v1906_v58 = vpop.permute.xlu0 %1905 }
 0x3a3   : > { %2760 = vmatpush3.xpose.msk.msra.mxu0 %vm752_vm3, %v1578_v52  ;;  %2761 = vmatprep.mubr.msk.f32.mxu0 %vm3229_vm1, %v3230_v12 }
 0x3a4   : > { %2722 = vmatmul.mubr.msk.f32.vlgmr.msra.gmra.mrb[6].mxu1 %vm752_vm3, %v915_v43  ;;  %2769 = vmatprep.subr.mxu0 %v3230_v12 }
 0x3a5   : > { %2726 = vmatprep.mubr.msk.f32.mxu1 %vm3229_vm1, %v3230_v12 }
 0x3a6   : > { %2762 = vmatmul.mubr.msk.f32.vlgmr.msra.gmra.mrb[10].mxu0 %vm752_vm3, %v1576_v54 }
 0x3a7   : > { %2770 = vmatpush3.xpose.msk.msra.mxu0 %vm752_vm3, %v1743_v55  ;;  %2771 = vmatprep.mubr.msk.f32.mxu0 %vm3229_vm1, %v3230_v12 }
 0x3a8   : > { %2779 = vmatprep.subr.mxu0 %v3230_v12 }
 0x3aa   : > { %2772 = vmatmul.mubr.msk.f32.vlgmr.msra.gmra.mrb[12].mxu0 %vm752_vm3, %v1741_v56 }
 0x3ab   : > { %2780 = vmatpush3.xpose.msk.msra.mxu0 %vm752_vm3, %v1908_v57  ;;  %2781 = vmatprep.mubr.msk.f32.mxu0 %vm3229_vm1, %v3230_v12 }
 0x3ac   : > { %2840 = vmatprep.subr.bf16.mxu0 %v3228_v4 }
 0x3ae   : > { %2782 = vmatmul.mubr.msk.f32.vlgmr.msra.gmra.mrb[14].mxu0 %vm752_vm3, %v1906_v58 }
 0x3af   : > { %2797 = vmatprep.mubr.msk.f32.mxu0 %vm3229_vm1, %v3230_v12 }
 0x46d   : > { %v1154_v59 = vpop.f32.mrb[4].mxu0 }
 0x46e   : > { %v2733_v60 = vpop.f32.mrb[5].mxu0  ;;  %v1158_v61 = vsel %vm829_vm4, %v1154_v59, -inf }
 0x46f   : > { %1159 = vmax.xlane.f32.xlu0 %v1158_v61 }
 0x471   : > { %v1319_v62 = vpop.f32.mrb[6].mxu0 }
 0x472   : > { %v2743_v63 = vpop.f32.mrb[7].mxu0  ;;  %v1323_v0 = vsel %vm829_vm4, %v1319_v62, -inf }
 0x473   : > { %v3615_v1 = vpop.f32.mrb[4].mxu1  ;;  %1324 = vmax.xlane.f32.xlu0 %v1323_v0 }
 0x474   : > { %v2718_v2 = vpop.f32.mrb[5].mxu1 }
 0x475   : > { %v1484_v3 = vpop.f32.mrb[8].mxu0 }
 0x476   : > { %v2753_v5 = vpop.f32.mrb[9].mxu0  ;;  %v1488_v13 = vsel %vm829_vm4, %v1484_v3, -inf }
 0x477   : > { %v3617_v6 = vpop.f32.mrb[6].mxu1 }
 0x478   : > { %v2723_v7 = vpop.f32.mrb[7].mxu1  ;;  %v992_v8 = vsel %vm829_vm4, %v3617_v6, -inf }
 0x479   : > { %993 = vmax.xlane.f32.xlu1 %v992_v8  ;;  %v1649_v9 = vpop.f32.mrb[10].mxu0 }
 0x47a   : > { %v2763_v10 = vpop.f32.mrb[11].mxu0  ;;  %v1653_v11 = vsel %vm829_vm4, %v1649_v9, -inf }
 0x47b   : > { %1654 = vmax.xlane.f32.xlu0 %v1653_v11 }
 0x47d   : > { %1489 = vmax.xlane.f32.xlu1 %v1488_v13  ;;  %v1814_v14 = vpop.f32.mrb[12].mxu0 }
 0x47e   : > { %v2773_v15 = vpop.f32.mrb[13].mxu0  ;;  %v1818_v16 = vsel %vm829_vm4, %v1814_v14, -inf }
 0x481   : > { %1819 = vmax.xlane.f32.xlu1 %v1818_v16  ;;  %v1979_v17 = vpop.f32.mrb[14].mxu0 }
 0x482   : > { %v2783_v18 = vpop.f32.mrb[15].mxu0  ;;  %v1983_v19 = vsel %vm829_vm4, %v1979_v17, -inf }
 0x483   : > { %1984 = vmax.xlane.f32.xlu0 %v1983_v19 }
 0x4fc   : > { %v1160_v20 = vpop.xlane.xlu0 %1159 }
 0x4fd   : > { %v1161_v21 = vsub.f32 %v1154_v59, %v1160_v20 }
 0x4ff   : > { %v1162_v22 = vmul.f32 1.442695, %v1161_v21 }
 0x500   : > { %v1325_v23 = vpop.xlane.xlu0 %1324 }
 0x501   : > { %2963 = vpow2.f32 %v1162_v22  ;;  %v1326_v24 = vsub.f32 %v1319_v62, %v1325_v23 }
 0x503   : > { %v1327_v25 = vmul.f32 1.442695, %v1326_v24 }
 0x505   : > { %2965 = vpow2.f32 %v1327_v25  ;;  %v2110_v25 = vld [vmem:[#allocation13] sm:$0xff] }
 0x506   : > { %v994_v26 = vpop.xlane.xlu1 %993 }
 0x507   : > { %v995_v52 = vsub.f32 %v3617_v6, %v994_v26  ;;  %v2111_v26 = vld [vmem:[#allocation13 + $0x8] sm:$0xff] }
 0x508   : > { %v1655_v27 = vpop.xlane.xlu0 %1654 }
 0x509   : > { %v1656_v28 = vsub.f32 %v1649_v9, %v1655_v27  ;;  %v996_v53 = vmul.f32 1.442695, %v995_v52 }
 0x50a   : > { %v1490_v29 = vpop.xlane.xlu1 %1489 }
 0x50b   : > { %v3625_v30 = vpop.eup %2963  ;;  %v1657_v31 = vmul.f32 1.442695, %v1656_v28  ;;  %v1491_v32 = vsub.f32 %v1484_v3, %v1490_v29  ;;  %v2841_v28 = vpack.c.bf16 %v2111_v26, %v2110_v25  ;;  %v2231_v25 = vlaneseq (!%p2601_p2) }
 0x50c   : > { %v1164_v33 = vsel %vm829_vm4, %v3625_v30, 0.0 }
 0x50d   : > { %2967 = vpow2.f32 %v1657_v31  ;;  %v1492_v34 = vmul.f32 1.442695, %v1491_v32  ;;  %1165 = vadd.xlane.f32.xlu0 %v1164_v33  ;;  %2842 = vmatpush3.bf16.msra.mxu0 %v2841_v28  ;;  %v2366_v28 = vld [vmem:[#allocation14 + $0x8] sm:$0xff] (!%p2601_p2) }
 0x50e   : > { %v1820_v35 = vpop.xlane.xlu1 %1819  ;;  %2843 = vmatprep.subr.bf16.mxu0 %v3228_v4 }
 0x50f   : > { %v3629_v36 = vpop.eup %2965  ;;  %2969 = vpow2.f32 %v1492_v34  ;;  %v1821_v37 = vsub.f32 %v1814_v14, %v1820_v35 }
 0x510   : > { %v1985_v38 = vpop.xlane.xlu0 %1984  ;;  %v1329_v39 = vsel %vm829_vm4, %v3629_v36, 0.0 }
 0x511   : > { %v1822_v41 = vmul.f32 1.442695, %v1821_v37  ;;  %v1986_v42 = vsub.f32 %v1979_v17, %v1985_v38  ;;  %1330 = vadd.xlane.f32.xlu1 %v1329_v39 }
 0x513   : > { %2971 = vpow2.f32 %v1822_v41  ;;  %v1987_v43 = vmul.f32 1.442695, %v1986_v42 }
 0x515   : > { %2973 = vpow2.f32 %v1987_v43 }
 0x516   : > { %2975 = vpow2.f32 %v996_v53 }
 0x517   : > { %v3633_v44 = vpop.eup %2967 }
 0x518   : > { %v1659_v45 = vsel %vm829_vm4, %v3633_v44, 0.0 }
 0x519   : > { %v2970_v46 = vpop.eup %2969  ;;  %1660 = vadd.xlane.f32.xlu1 %v1659_v45 }
 0x51a   : > { %v1494_v47 = vsel %vm829_vm4, %v2970_v46, 0.0 }
 0x51b   : > { %1495 = vadd.xlane.f32.xlu0 %v1494_v47 }
 0x51d   : > { %v3638_v48 = vpop.eup %2971 }
 0x51e   : > { %v1824_v49 = vsel %vm829_vm4, %v3638_v48, 0.0 }
 0x51f   : > { %v3642_v50 = vpop.eup %2973  ;;  %1825 = vadd.xlane.f32.xlu0 %v1824_v49 }
 0x520   : > { %v1989_v51 = vsel %vm829_vm4, %v3642_v50, 0.0  ;;  %v2976_v54 = vpop.eup %2975 }
 0x521   : > { %1990 = vadd.xlane.f32.xlu1 %v1989_v51  ;;  %v998_v55 = vsel %vm829_vm4, %v2976_v54, 0.0 }
 0x532   : > { %1169 = vrot.lane.b32.xlu1 %v3567_v40, %s3232_s29  ;;  %s2194_s29 = scalar_lea.vmem [#allocation2], %s2568_s27 }
 0x535   : > { %1004 = vrot.lane.b32.xlu0 %v3567_v40, %s3231_s14 }
 0x539   : > { %1499 = vrot.lane.b32.xlu0 %v3567_v40, %s3234_s22 }
 0x53d   : > { %1829 = vrot.lane.b32.xlu0 %v3567_v40, %s3236_s24 }
 0x556   : > { %999 = vadd.xlane.f32.xlu1 %v998_v55 }
 0x567   : > { %1334 = vrot.lane.b32.xlu1 %v3567_v40, %s3233_s13 }
 0x56b   : > { %1664 = vrot.lane.b32.xlu1 %v3567_v40, %s3235_s23 }
 0x56f   : > { %1994 = vrot.lane.b32.xlu1 %v3567_v40, %s3237_s30 }
 0x59a   : > { %v1166_v56 = vpop.xlane.xlu0 %1165 }
 0x59e   : > { %v1331_v60 = vpop.xlane.xlu1 %1330 }
 0x5a6   : > { %v1661_v61 = vpop.xlane.xlu1 %1660 }
 0x5a8   : > { %v1496_v57 = vpop.xlane.xlu0 %1495 }
 0x5ac   : > { %v1826_v58 = vpop.xlane.xlu0 %1825 }
 0x5ae   : > { %v1991_v62 = vpop.xlane.xlu1 %1990 }
 0x5b0   : > { %v1005_v59 = vpop.permute.xlu0 %1004 }
 0x5b1   : > { %2725 = vmatpush3.msra.mxu1 %v1005_v59 }
 0x5b2   : > { %2734 = vmatprep.subr.mxu1 %v3230_v12  ;;  %v1170_v63 = vpop.permute.xlu1 %1169 }
 0x5b4   : > { %v1500_v10 = vpop.permute.xlu0 %1499 }
 0x5b8   : > { %v1830_v17 = vpop.permute.xlu0 %1829 }
 0x5e3   : > { %v1000_v0 = vpop.xlane.xlu1 %999 }
 0x5e4   : > { %2977 = vrcp.f32 %v1000_v0 }
 0x5e5   : > { %2979 = vrcp.f32 %v1166_v56 }
 0x5e6   : > { %2981 = vrcp.f32 %v1331_v60 }
 0x5e7   : > { %2983 = vrcp.f32 %v1496_v57  ;;  %v1335_v7 = vpop.permute.xlu1 %1334 }
 0x5e8   : > { %2985 = vrcp.f32 %v1661_v61 }
 0x5e9   : > { %2987 = vrcp.f32 %v1826_v58 }
 0x5ea   : > { %2989 = vrcp.f32 %v1991_v62 }
 0x5eb   : > { %v1665_v14 = vpop.permute.xlu1 %1664 }
 0x5ee   : > { %v2978_v2 = vpop.eup %2977 }
 0x5ef   : > { %v1002_v3 = vmul.f32 %v2978_v2, %v2976_v54  ;;  %v2980_v5 = vpop.eup %2979  ;;  %v1995_v20 = vpop.permute.xlu1 %1994 }
 0x5f0   : > { %v1168_v40 = vmul.f32 %v2980_v5, %v3625_v30  ;;  %v2982_v6 = vpop.eup %2981  ;;  %v2113_v30 = vld [vmem:[#allocation13 + $0x18] sm:$0xff] }
 0x5f1   : > { %2727 = vmatmul.mubr.msk.f32.vlgmr.msra.gmra.mrb[8].mxu1 %vm829_vm4, %v1002_v3  ;;  %v1333_v8 = vmul.f32 %v2982_v6, %v3629_v36  ;;  %v2984_v9 = vpop.eup %2983 }
 0x5f2   : > { %2735 = vmatpush3.msra.mxu1 %v1170_v63  ;;  %2736 = vmatprep.mubr.msk.f32.mxu1 %vm3229_vm1, %v3230_v12  ;;  %v1498_v11 = vmul.f32 %v2984_v9, %v2970_v46  ;;  %v2986_v13 = vpop.eup %2985 }
 0x5f3   : > { %2744 = vmatprep.subr.mxu1 %v3230_v12  ;;  %v1663_v15 = vmul.f32 %v2986_v13, %v3633_v44  ;;  %v2988_v16 = vpop.eup %2987 }
 0x5f4   : > { %v1828_v18 = vmul.f32 %v2988_v16, %v3638_v48  ;;  %v2990_v19 = vpop.eup %2989  ;;  %v2281_v16 = vld [vmem:[%s3769_s11 + $0x8] sm:$0xff] (!%p2601_p2) }
 0x5f5   : > { %2737 = vmatmul.mubr.msk.f32.vlgmr.msra.gmra.mrb[10].mxu1 %vm829_vm4, %v1168_v40  ;;  %v1993_v21 = vmul.f32 %v2990_v19, %v3642_v50  ;;  %v2283_v19 = vld [vmem:[%s3769_s11 + $0x18] sm:$0xff] (!%p2601_p2) }
 0x5f6   : > { %2745 = vmatpush3.msra.mxu1 %v1335_v7  ;;  %2746 = vmatprep.mubr.msk.f32.mxu1 %vm3229_vm1, %v3230_v12  ;;  %v2196_v7 = vld [vmem:[#allocation3] sm:$0x1] }
 0x5f7   : > { %2754 = vmatprep.subr.mxu1 %v3230_v12 }
 0x5f9   : > { %2747 = vmatmul.mubr.msk.f32.vlgmr.msra.gmra.mrb[12].mxu1 %vm829_vm4, %v1333_v8 }
 0x5fa   : > { %2755 = vmatpush3.msra.mxu1 %v1500_v10  ;;  %2756 = vmatprep.mubr.msk.f32.mxu1 %vm3229_vm1, %v3230_v12  ;;  %v2207_v10 = vld [vmem:[#allocation4] sm:$0x1] }
 0x5fb   : > { %2764 = vmatprep.subr.mxu1 %v3230_v12 }
 0x5fd   : > { %2757 = vmatmul.mubr.msk.f32.vlgmr.msra.gmra.mrb[14].mxu1 %vm829_vm4, %v1498_v11 }
 0x5fe   : > { %2765 = vmatpush3.msra.mxu1 %v1665_v14  ;;  %2766 = vmatprep.mubr.msk.f32.mxu1 %vm3229_vm1, %v3230_v12 }
 0x5ff   : > { %2774 = vmatprep.subr.mxu1 %v3230_v12 }
 0x601   : > { %2767 = vmatmul.mubr.msk.f32.vlgmr.msra.gmra.mrb[16].mxu1 %vm829_vm4, %v1663_v15  ;;  %v2280_v15 = vld [vmem:[%s3769_s11] sm:$0xff] (!%p2601_p2) }
 0x602   : > { %2775 = vmatpush3.msra.mxu1 %v1830_v17  ;;  %2776 = vmatprep.mubr.msk.f32.mxu1 %vm3229_vm1, %v3230_v12  ;;  %v2282_v17 = vld [vmem:[%s3769_s11 + $0x10] sm:$0xff] (!%p2601_p2) }
 0x603   : > { %2784 = vmatprep.subr.mxu1 %v3230_v12 }
 0x605   : > { %2777 = vmatmul.mubr.msk.f32.vlgmr.msra.gmra.mrb[18].mxu1 %vm829_vm4, %v1828_v18  ;;  %v2846_v18 = vpack.c.bf16 (!%p2601_p2), %v2281_v16, %v2280_v15 }
 0x606   : > { %2785 = vmatpush3.msra.mxu1 %v1995_v20  ;;  %2786 = vmatprep.mubr.msk.f32.mxu1 %vm3229_vm1, %v3230_v12  ;;  %v2112_v12 = vld [vmem:[#allocation13 + $0x10] sm:$0xff] }
 0x607   : > { %v2844_v32 = vpack.c.bf16 %v2113_v30, %v2112_v12  ;;  %v2368_v30 = vld [vmem:[#allocation14 + $0x18] sm:$0xff] (!%p2601_p2) }
 0x609   : > { %2787 = vmatmul.mubr.msk.f32.vlgmr.msra.gmra.mrb[20].mxu1 %vm829_vm4, %v1993_v21  ;;  %2845 = vmatpush3.bf16.msra.mxu0 %v2844_v32 }
 0x60a   : > { %2847 = vmatprep.subr.bf16.mxu0 (!%p2601_p2), %v2846_v18 }
 0x6c4   : > { %v1076_v22 = vpop.f32.mrb[8].mxu1 }
 0x6c5   : > { %2071 = vrot.lane.b32.xlu0 %v1076_v22, %s3238_s17  ;;  %v2728_v23 = vpop.f32.mrb[9].mxu1  ;;  %v2850_v22 = vpack.c.bf16 (!%p2601_p2), %v2283_v19, %v2282_v17 }
 0x6c8   : > { %v1241_v24 = vpop.f32.mrb[10].mxu1 }
 0x6c9   : > { %2075 = vrot.lane.b32.xlu1 %v1241_v24, %s3239_s10  ;;  %v2738_v27 = vpop.f32.mrb[11].mxu1 }
 0x6ca   : > { %v2365_v27 = vld [vmem:[#allocation14] sm:$0xff] (!%p2601_p2) }
 0x6cb   : > { %v2854_v12 = vpack.c.bf16 (!%p2601_p2), %v2366_v28, %v2365_v27 }
 0x6cc   : > { %v1406_v29 = vpop.f32.mrb[12].mxu1 }
 0x6cd   : > { %2079 = vrot.lane.b32.xlu0 %v1406_v29, %s3240_s19  ;;  %v2748_v31 = vpop.f32.mrb[13].mxu1  ;;  %v2367_v29 = vld [vmem:[#allocation14 + $0x10] sm:$0xff] (!%p2601_p2)  ;;  %2855 = vmatprep.subr.bf16.mxu1 (!%p2601_p2), %v2854_v12 }
 0x6ce   : > { %v2858_v32 = vpack.c.bf16 (!%p2601_p2), %v2368_v30, %v2367_v29  ;;  %2857 = vmatpush3.bf16.msra.mxu1 (!%p2601_p2), %v2854_v12 }
 0x6d0   : > { %v1571_v33 = vpop.f32.mrb[14].mxu1  ;;  %2859 = vmatprep.subr.bf16.mxu1 (!%p2601_p2), %v2858_v32 }
 0x6d1   : > { %2083 = vrot.lane.b32.xlu1 %v1571_v33, %s3241_s15  ;;  %v2758_v34 = vpop.f32.mrb[15].mxu1  ;;  %v2232_v33 = vshrl.u32 (!%p2601_p2), %v2231_v25, 7 }
 0x6d2   : > { %2861 = vmatpush3.bf16.msra.mxu1 (!%p2601_p2), %v2858_v32 }
 0x6d4   : > { %v1736_v35 = vpop.f32.mrb[16].mxu1 }
 0x6d5   : > { %2087 = vrot.lane.b32.xlu0 %v1736_v35, %s3242_s28  ;;  %v2768_v36 = vpop.f32.mrb[17].mxu1  ;;  %v2233_v35 = vsub.s32 (!%p2601_p2), 0, %v2232_v33 }
 0x6d8   : > { %v1901_v37 = vpop.f32.mrb[18].mxu1 }
 0x6d9   : > { %2091 = vrot.lane.b32.xlu1 %v1901_v37, %s3243_s20  ;;  %v2778_v38 = vpop.f32.mrb[19].mxu1  ;;  %s3792_s20 = sld [smem:[#allocation23_spill]] (!%p2601_p2) }
 0x6dc   : > { %v2066_v4 = vpop.f32.mrb[20].mxu1 }
 0x6dd   : > { %2095 = vrot.lane.b32.xlu0 %v2066_v4, %s3244_s21  ;;  %v2788_v39 = vpop.f32.mrb[21].mxu1 }
 0x737   : > { %v2072_v41 = vpop.permute.xlu0 %2071 }
 0x738   : > { %v2098_v45 = vsel %vm752_vm3, %v3615_v1, %v2072_v41  ;;  %v2599_v1 = vld [vmem:[%s3766_s8] ss:$0 sm:$0xff] }
 0x73b   : > { %v2076_v42 = vpop.permute.xlu1 %2075 }
 0x73c   : > { %v2099_v46 = vsel %vm829_vm4, %v2098_v45, %v2076_v42 }
 0x73f   : > { %v2080_v43 = vpop.permute.xlu0 %2079 }
 0x740   : > { %v2101_v48 = vsel %vm2100_vm5, %v2099_v46, %v2080_v43  ;;  %v2602_v43 = vld [vmem:[%s3767_s9] ss:$0 sm:$0xff] (!%p2601_p2) }
 0x741   : > { %v2603_v46 = vld [vmem:[%s3792_s20] ss:$0 sm:$0xff] (!%p2601_p2) }
 0x743   : > { %v2084_v44 = vpop.permute.xlu1 %2083 }
 0x744   : > { %v2103_v50 = vsel %vm2102_vm6, %v2101_v48, %v2084_v44 }
 0x747   : > { %v2088_v47 = vpop.permute.xlu0 %2087 }
 0x748   : > { %v2105_v51 = vsel %vm2104_vm7, %v2103_v50, %v2088_v47 }
 0x74b   : > { %v2092_v49 = vpop.permute.xlu1 %2091 }
 0x74c   : > { %v2107_v52 = vsel %vm2106_vm8, %v2105_v51, %v2092_v49 }
 0x74f   : > { %v2096_v53 = vpop.permute.xlu0 %2095 }
 0x750   : > { %v2109_v54 = vsel %vm2108_vm9, %v2107_v52, %v2096_v53 }
 0x751   : > { %2798 = vmatmul.mubr.msk.f32.vlgmr.msra.gmra.mrb[16].mxu0 %vm516_vm2, %v2109_v54 }
 0x752   : > { %2849 = vmatpush3.bf16.msra.mxu0 (!%p2601_p2), %v2846_v18 }
 0x753   : > { %2851 = vmatprep.subr.bf16.mxu0 (!%p2601_p2), %v2850_v22 }
 0x756   : > { %2853 = vmatpush3.bf16.msra.mxu0 (!%p2601_p2), %v2850_v22 }
 0x824   : > { %v2190_v55 = vpop.f32.mrb[16].mxu0 }
 0x825   : > { %v2191_v56 = vadd.f32 %v2599_v1, %v2190_v55  ;;  %v2799_v57 = vpop.f32.mrb[17].mxu0 }
 0x826   : > { %v2276_v57 = vld [vmem:[#allocation5] sm:$0xff] (!%p2601_p2) }
 0x827   : > { %2195 = vst.msk [vmem:[%s2194_s29] sm:$0xff] %vm516_vm2, %v2191_v56  ;;  %v2197_v58 = vsel %vm516_vm2, %v2191_v56, 0.0  ;;  %v2208_v59 = vmul.f32 %v2191_v56, %v2191_v56 }
 0x828   : > { %v2198_v60 = vrot.slane %v2197_v58, 4 }
 0x829   : > { %v2209_v61 = vsel %vm516_vm2, %v2208_v59, 0.0 }
 0x82a   : > { %v2199_v62 = vadd.f32 %v2198_v60, %v2197_v58  ;;  %v2210_v63 = vrot.slane %v2209_v61, 4  ;;  %v2277_v60 = vld [vmem:[#allocation5 + $0x8] sm:$0xff] (!%p2601_p2) }
 0x82c   : > { %v2200_v0 = vrot.slane %v2199_v62, 2  ;;  %v2211_v2 = vadd.f32 %v2210_v63, %v2209_v61 }
 0x82e   : > { %v2201_v3 = vadd.f32 %v2200_v0, %v2199_v62  ;;  %v2212_v5 = vrot.slane %v2211_v2, 2  ;;  %v2228_v37 = vld [vmem:[#allocation2] sm:$0xff] (!%p2601_p2)  ;;  %v2229_v38 = vld [vmem:[#allocation2 + $0x8] sm:$0xff] (!%p2601_p2) }
 0x830   : > { %v2202_v40 = vrot.slane %v2201_v3, 1  ;;  %v2213_v6 = vadd.f32 %v2212_v5, %v2211_v2 }
 0x832   : > { %v2203_v8 = vadd.f32 %v2202_v40, %v2201_v3  ;;  %v2214_v9 = vrot.slane %v2213_v6, 1  ;;  %2221 = sbr.rel (%p2601_p2) target bundleno = 2587 (0xa1b), region = 104 }
 0x834   : > { %v2204_v11 = vadd.f32 %v2203_v8, %v2196_v7  ;;  %v2215_v13 = vadd.f32 %v2214_v9, %v2213_v6 }
 0x836   : > { %2206 = vst.msk [vmem:[#allocation3] sm:$0x1] %vm2205_vm10, %v2204_v11  ;;  %v2216_v14 = vadd.f32 %v2215_v13, %v2207_v10 }
 0x838   : > { %2217 = vst.msk [vmem:[#allocation4] sm:$0x1] %vm2205_vm10, %v2216_v14 }
 0x83d   : > { %v2222_v20 = vld [vmem:[#allocation3] sm:$0x1] }
 0x83e   : > { %v2223_v23 = vmul.f32 0.0625, %v2222_v20 }
 0x83f   : > { %v2224_v21 = vld [vmem:[#allocation4] sm:$0x1] }
 0x840   : > { %v2225_v24 = vmul.f32 0.0625, %v2224_v21  ;;  %v2226_v26 = vmul.f32 %v2223_v23, %v2223_v23  ;;  %v2234_v36 = vrot.slane %v2223_v23, %v2233_v35 }
 0x842   : > { %v2227_v31 = vsub.f32 %v2225_v24, %v2226_v26  ;;  %v2236_v4 = vsub.f32 %v2228_v37, %v2234_v36  ;;  %v2237_v39 = vsub.f32 %v2229_v38, %v2234_v36 }
 0x844   : > { %v2238_v34 = vadd.f32 1e-05, %v2227_v31 }
 0x846   : > { %2991 = vrsqrt.f32 %v2238_v34 }
 0x850   : > { %v2992_v41 = vpop.eup %2991 }
 0x851   : > { %v2244_v42 = vrot.slane %v2992_v41, %v2233_v35 }
 0x853   : > { %v2246_v44 = vmul.f32 %v2244_v42, %v2236_v4  ;;  %v2247_v45 = vmul.f32 %v2244_v42, %v2237_v39 }
 0x855   : > { %v2255_v47 = vmul.f32 %v2602_v43, %v2246_v44  ;;  %v2256_v48 = vmul.f32 %v2602_v43, %v2247_v45 }
 0x857   : > { %v2264_v49 = vadd.f32 %v2603_v46, %v2255_v47  ;;  %v2265_v50 = vadd.f32 %v2603_v46, %v2256_v48 }
 0x859   : > { %v2268_v51 = vmul.f32 0.70710677, %v2264_v49  ;;  %v2269_v52 = vmul.f32 0.70710677, %v2265_v50  ;;  %v2266_v53 = vmul.f32 0.5, %v2264_v49  ;;  %v2267_v1 = vmul.f32 0.5, %v2265_v50 }
 0x85b   : > { %2993 = verf.f32 %v2268_v51 }
 0x85c   : > { %2995 = verf.f32 %v2269_v52 }
 0x865   : > { %v2994_v54 = vpop.eup %2993 }
 0x866   : > { %v2996_v55 = vpop.eup %2995  ;;  %v2272_v56 = vadd.f32 1.0, %v2994_v54 }
 0x867   : > { %v2273_v58 = vadd.f32 1.0, %v2996_v55 }
 0x868   : > { %v2274_v59 = vmul.f32 %v2272_v56, %v2266_v53 }
 0x869   : > { %v2275_v61 = vmul.f32 %v2273_v58, %v2267_v1 }
 0x86a   : > { %v2278_v62 = vadd.f32 %v2276_v57, %v2274_v59 }
 0x86b   : > { %v2279_v63 = vadd.f32 %v2277_v60, %v2275_v61 }
 0x86c   : > { %2808 = vmatprep.mubr.msk.f32.mxu0 %vm516_vm2, %v2278_v62 }
 0x86d   : > { %2809 = vmatmul.mubr.msk.f32.vlgmr.msra.gmra.mrb[0].mxu0 %vm516_vm2, %v2279_v63 }
 0x940   : > { %v2810_v0 = vpop.f32.mrb[0].mxu0 }
 0x941   : > { %v2356_v2 = vpop.f32.mrb[1].mxu0 }
 0x942   : > { %2819 = vmatprep.mubr.msk.f32.mxu1 %vm516_vm2, %v2356_v2 }
 0x943   : > { %2820 = vmatmul.mubr.msk.f32.vlgmr.msra.gmra.mrb[0].mxu1 %vm516_vm2, %v2810_v0 }
 0xa16   : > { %v2821_v3 = vpop.f32.mrb[0].mxu1 }
 0xa17   : > { %v2447_v5 = vadd.f32 %v2821_v3, %v2279_v63  ;;  %v2441_v40 = vpop.f32.mrb[1].mxu1 }
 0xa18   : > { %v2442_v6 = vadd.f32 %v2441_v40, %v2278_v62 }
 0xa19   : > { %2451 = vst.msk [vmem:[#allocation16 + $0x8] sm:$0xff] %vm516_vm2, %v2447_v5 }
 0xa1a   : > { %2450 = vst.msk [vmem:[#allocation16] sm:$0xff] %vm516_vm2, %v2442_v6 }
 0xa1b PF: > { %p2921_p10 = scmp.eq.s32.totalorder %s3323_s26, 1  ;;  %s3245_s21 = smov [#allocation16]  }
 0xa1c   : > { %s2458_s25 = sshll.u32 %s3245_s21, 4  ;;  %s2459_s25 = int_to_ptr.vmem [resolvable:$true] %s2458_s25 }
 0xa1d   : > { %s3165_s14 = scalar_lea.vmem %s2459_s25, 256  ;;  %p3172_p8 = scmp.lt.s32.totalorder %s2459_s25, %s2459_s25 }
 0xa1e   : > { %p3166_p11 = scmp.ne.s32.totalorder %s2459_s25, %s3165_s14  ;;  %p3173_p4 = scmp.lt.s32.totalorder %s3165_s14, %s3165_s14 }
 0xa20   : > { %p3167_p12 = pnand %p3166_p11, %p2921_p10  ;;  %p3174_p13 = por %p3173_p4, %p3172_p8 }
 0xa22   : > { %p3168_p3 = pneg %p3167_p12 }
 0xa24   : > { %p3175_p0 = pnand %p3174_p13, %p3168_p3 }
 0xa26   : > { %3178 = shalt.err (!%p3175_p0)
}
 0xa27   : > { %s3793_s13 = sld [smem:[#allocation24_spill]] }
 0xa2d   : > { %s3179_s22 = scalar_lea.hbm %s3793_s13, 256 }
 0xa2e   : > { %p3180_p1 = scmp.ne.s32.totalorder %s3793_s13, %s3179_s22  ;;  %p3185_p7 = scmp.lt.u32.totalorder %s3179_s22, %s3793_s13 }
 0xa30   : > { %p3181_p6 = pnand %p3180_p1, %p2921_p10 }
 0xa32   : > { %p3182_p5 = pneg %p3181_p6 }
 0xa34   : > { %p3187_p9 = pnand %p3185_p7, %p3182_p5 }
 0xa36   : > { %3190 = shalt.err (!%p3187_p9)
}
 0xa37   : > { %s3246_s18 = smov 128  }
 0xa38   : > { %2887 = dma.vmem_to_hbm [thread:$0]  (%p2921_p10), %s2459_s25, 256, %s3793_s13, [#allocation7], %s3246_s18, %s3246_s18, %s3239_s10  }
 0xa39   : > { %3212 = dma.done.wait (%p2921_p10), [#allocation7], 256  }
 0xa3a   : > { %3214 = vsyncadd (%p2921_p10), [#allocation7], 4294967040 }
 0xa3b PF: > { %s3794_s15 = sld [smem:[#allocation22_spill]] }
 0xa41   : > { %s28_s25 = sadd.s32 1, %s3794_s15  }
 0xa42   : > { %p25_p2 = scmp.ge.s32.totalorder %s28_s25, 4  }
 0xa44   :  { %27 = sbr.rel (!%p25_p2) target bundleno = 8 (0x8), region = 131 }
 0xa4b   :  { %2474 = vsyncpa [#allocation6], 1 }
 0xa4c   :  { %2476 = vsyncpa [#allocation6 + $0x1], 1 }
 0xa4d   :  { %2477 = vsyncpa [#allocation9], 1 }
 0xa4e   :  { %2478 = vsyncpa [#allocation12], 1 }
 0xa4f   :  { %2479 = vsyncpa [#allocation15], 1 }
 0xa50   :  { %2480 = vsyncpa [#allocation7], 1 }
 0xa51   :  { %2482 = vsyncpa [#allocation7 + $0x1], 1 }

</bundles_post_ra>
